<compile_context>
chip_gen: v6e
topology: v6e:2x2x1
jax: 0.10.0
libtpu: 0.0.40
codegen_flags: <defaults>
</compile_context>

<pallas_src>
import jax
import jax.numpy as jnp
from jax.experimental import pallas as pl
from jax.experimental.pallas import tpu as pltpu

MAX_LENGTH = 15          # L  (forced by encoder_outputs.reshape(-1, 15, 256))
L_PAD = 16               # encoder rows padded to the bf16 sublane pack
HIDDEN_SIZE = 256        # H  (forced by the .reshape(-1, 256))
EMBEDDING_SIZE = 128     # E
OUTPUT_SIZE = 256        # V  (vocab of the output projection)
VOCAB_SIZE = 128         # rows of the embedding table (input vocab)

AW_PAD = 128                                     # lanes reserved for attn weights
OUT_W = OUTPUT_SIZE + 2 * HIDDEN_SIZE + AW_PAD   # 896-lane packed output slab


def _attn_decoder_kernel(
    ids_ref,      # SMEM (T,)   int32   scalar-prefetched token ids (used by index_maps)
    emb_ref,      # VMEM (1, 1, E) f32  gathered embedding row for this step
    enc_ref,      # VMEM (L_PAD, H) bf16 padded encoder outputs (resident)
    hc0_ref,      # VMEM (2, H) f32     initial (h, c) (read at step 0 only)
    whh_ref,      # VMEM (H, 2H+V) bf16 [Wa_enc | Wa_hid | Wout^T]
    wbig_ref,     # VMEM (2H, H+4H) bf16 [Wcomb^T (zero padded) | Wlstm stacked]
    bias_ref,     # VMEM (1, 3H+V+4H) f32 [b_attn | b_comb | b_out | w_attn2 | b_lstm]
    out_ref,      # VMEM (1, 1, OUT_W) f32 packed per-step output slab
    hc_ref,       # VMEM scratch (2, H) f32 recurrent state (persists across steps)
    cat_eh_ref,   # VMEM scratch (1, E+H) f32
    cat_xh_ref,   # VMEM scratch (1, 2H) f32
):
    del ids_ref   # the gather happens in the embedding index_map
    f32 = jnp.float32
    bf16 = jnp.bfloat16
    H, E, V, L, LP = HIDDEN_SIZE, EMBEDDING_SIZE, OUTPUT_SIZE, MAX_LENGTH, L_PAD

    t = pl.program_id(0)

    @pl.when(t == 0)
    def _():
        hc_ref[...] = hc0_ref[...]

    h0 = hc_ref[0:1, :]          # (1, H) f32 (recurrent state carried in f32)
    c0 = hc_ref[1:2, :]
    h0_bf = h0.astype(bf16)
    enc_bf = enc_ref[...]        # (LP, H) bf16

    # ---- static, 128-aligned slices of the packed weight slabs
    w_attn_enc = whh_ref[:, 0:H]
    w_attn_hid = whh_ref[:, H:2 * H]
    w_out = whh_ref[:, 2 * H:2 * H + V]
    w_comb = wbig_ref[0:E + H, 0:H]
    w_lstm = wbig_ref[:, H:H + 4 * H]
    o = 0
    b_attn = bias_ref[:, o:o + H]; o += H
    b_comb = bias_ref[:, o:o + H]; o += H
    b_out = bias_ref[:, o:o + V]; o += V
    w_attn2 = bias_ref[:, o:o + H]; o += H
    b_lstm = bias_ref[:, o:o + 4 * H]

    # ---- embedding row (gathered by the BlockSpec index_map). Dropout(p=0.1)
    #      on the embedding is eval-mode identity (deterministic).
    embedded = emb_ref[0]        # (1, E) f32

    # ---- attention scores: relu(attn(cat(enc, broadcast(hidden)))) via split matmuls
    pre = (jnp.dot(enc_bf, w_attn_enc, preferred_element_type=f32)
           + jnp.dot(h0_bf, w_attn_hid, preferred_element_type=f32)   # broadcasts over rows
           + b_attn)                                                  # (LP, H)
    hattn = jnp.maximum(pre, 0.0)

    # attn2 logits, lane-dense (1, LP); padded row masked; attn2 bias is inert under softmax.
    logits = jax.lax.dot_general(
        w_attn2.astype(bf16), hattn.astype(bf16),
        dimension_numbers=(((1,), (1,)), ((), ())),
        preferred_element_type=f32)                                   # (1, LP)
    lane = jax.lax.broadcasted_iota(jnp.int32, (1, LP), 1)
    logits = jnp.where(lane < L, logits, -jnp.inf)
    m = jnp.max(logits, axis=-1, keepdims=True)
    e = jnp.exp(logits - m)
    aw = e / jnp.sum(e, axis=-1, keepdims=True)                       # (1, LP), pad lane = 0

    # ---- bmm(attn_weights, encoder_outputs) as an MXU (1,LP)@(LP,H) matmul
    attn_applied = jnp.dot(aw.astype(bf16), enc_bf, preferred_element_type=f32)   # (1, H)

    # ---- attn_combine(cat(embedded, attn_applied)) + relu, one fused matmul
    cat_eh_ref[:, 0:E] = embedded
    cat_eh_ref[:, E:E + H] = attn_applied
    comb = jnp.dot(cat_eh_ref[...].astype(bf16), w_comb,
                   preferred_element_type=f32) + b_comb               # (1, H)
    x = jnp.maximum(comb, 0.0)

    # ---- single-step LSTM cell, ih/hh matmuls fused; PyTorch gate order (i, f, g, o)
    cat_xh_ref[:, 0:H] = x
    cat_xh_ref[:, H:2 * H] = h0
    gates = jnp.dot(cat_xh_ref[...].astype(bf16), w_lstm,
                    preferred_element_type=f32) + b_lstm              # (1, 4H)
    i_g = jax.nn.sigmoid(gates[:, 0:H])
    f_g = jax.nn.sigmoid(gates[:, H:2 * H])
    g_g = jnp.tanh(gates[:, 2 * H:3 * H])
    o_g = jax.nn.sigmoid(gates[:, 3 * H:4 * H])
    c1 = f_g * c0 + i_g * g_g
    h1 = o_g * jnp.tanh(c1)
    hc_ref[0:1, :] = h1          # carry recurrent state in f32 across steps
    hc_ref[1:2, :] = c1

    # ---- output projection + log_softmax over the vocab axis
    out_logits = jnp.dot(h1.astype(bf16), w_out, preferred_element_type=f32) + b_out
    mo = jnp.max(out_logits, axis=-1, keepdims=True)
    z = out_logits - mo
    logp = z - jnp.log(jnp.sum(jnp.exp(z), axis=-1, keepdims=True))

    # ---- packed lane-dense output slab: [logp | h1 | c1 | attn_weights]
    out_ref[0, :, 0:V] = logp
    out_ref[0, :, V:V + H] = h1
    out_ref[0, :, V + H:V + 2 * H] = c1
    out_ref[0, :, V + 2 * H:V + 2 * H + LP] = aw


def make_params(key, hidden_size=HIDDEN_SIZE, output_size=OUTPUT_SIZE,
                embedding_size=EMBEDDING_SIZE, vocab_size=VOCAB_SIZE):
    """Deterministic synthetic parameters with the same shapes as the torch module."""
    ks = jax.random.split(key, 12)
    s = 0.1
    return {
        "embedding":   s * jax.random.normal(ks[0], (vocab_size, embedding_size), jnp.float32),
        "attn_w":      s * jax.random.normal(ks[1], (hidden_size, 2 * hidden_size), jnp.float32),
        "attn_b":      s * jax.random.normal(ks[2], (hidden_size,), jnp.float32),
        "attn2_w":     s * jax.random.normal(ks[3], (1, hidden_size), jnp.float32),
        "attn2_b":     s * jax.random.normal(ks[4], (1,), jnp.float32),
        "combine_w":   s * jax.random.normal(ks[5], (hidden_size, embedding_size + hidden_size), jnp.float32),
        "combine_b":   s * jax.random.normal(ks[6], (hidden_size,), jnp.float32),
        "lstm_w_ih":   s * jax.random.normal(ks[7], (4 * hidden_size, hidden_size), jnp.float32),
        "lstm_w_hh":   s * jax.random.normal(ks[8], (4 * hidden_size, hidden_size), jnp.float32),
        "lstm_b_ih":   s * jax.random.normal(ks[9], (4 * hidden_size,), jnp.float32),
        "lstm_b_hh":   s * jax.random.normal(ks[10], (4 * hidden_size,), jnp.float32),
        "out_w":       s * jax.random.normal(ks[11], (output_size, hidden_size), jnp.float32),
        "out_b":       jnp.zeros((output_size,), jnp.float32),
    }


def prepare_weights(params, weight_dtype=jnp.bfloat16):
    """One-time weight prep: transposes, gate stacking, bias fusion, slab packing.

    Matmul weights are stored bf16 (f32 accumulation in-kernel); biases f32.
    The embedding table is stored as (VOCAB, 1, E) f32 so a single row can be
    gathered per step via the scalar-prefetch index_map.
    """
    H, E, V = HIDDEN_SIZE, EMBEDDING_SIZE, OUTPUT_SIZE
    wdt = weight_dtype

    attn_wT = params["attn_w"].T                                   # (2H, H)
    wa_enc, wa_hid = attn_wT[:H], attn_wT[H:]                      # cat order (encoder, hidden)
    wo_T = params["out_w"].T                                       # (H, V)
    w_hh_slab = jnp.concatenate([wa_enc, wa_hid, wo_T], axis=1).astype(wdt)        # (H, 2H+V)

    wc_T = params["combine_w"].T                                   # (E+H, H)
    wc_pad = jnp.concatenate(
        [wc_T, jnp.zeros((2 * H - (E + H), H), jnp.float32)], axis=0)              # (2H, H)
    w_lstm = jnp.concatenate(
        [params["lstm_w_ih"].T, params["lstm_w_hh"].T], axis=0)                    # (2H, 4H)
    w_big_slab = jnp.concatenate([wc_pad, w_lstm], axis=1).astype(wdt)             # (2H, H+4H)

    b_lstm = params["lstm_b_ih"] + params["lstm_b_hh"]
    bias_slab = jnp.concatenate([
        params["attn_b"], params["combine_b"], params["out_b"],
        params["attn2_w"].reshape(-1), b_lstm,
    ]).reshape(1, -1).astype(jnp.float32)                                          # (1, 3H+V+4H)
    # note: attn2 bias is intentionally dropped (cancelled by the softmax).

    return {
        "emb_table": params["embedding"].reshape(VOCAB_SIZE, 1, E).astype(jnp.float32),
        "w_hh_slab": w_hh_slab,
        "w_big_slab": w_big_slab,
        "bias_slab": bias_slab,
    }


@jax.jit
def attn_decoder_decode(prep, token_ids, hidden, context, encoder_outputs):
    """Teacher-forced multi-token decode: T steps inside ONE pallas_call.

    token_ids:       (T,)      int    tokens fed at each step
    hidden/context:  (1, 1, H) float32 initial LSTM state
    encoder_outputs: (1, L, H) float32 (anything reshapeable to (-1, 15, 256))

    Weights are DMA'd to VMEM once and stay resident across the step grid;
    (h, c) is carried in f32 VMEM scratch.  Returns per-step log-probs and
    attention weights plus the final (hidden, context).
    """
    H, E, V, L, LP = HIDDEN_SIZE, EMBEDDING_SIZE, OUTPUT_SIZE, MAX_LENGTH, L_PAD
    T = token_ids.shape[0]

    ids = token_ids.astype(jnp.int32).reshape(T)
    enc = encoder_outputs.astype(jnp.float32).reshape(-1, L, H)[0]       # (L, H)
    enc_pad = jnp.pad(enc, ((0, LP - L), (0, 0))).astype(jnp.bfloat16)   # (LP, H) bf16
    hc0 = jnp.concatenate(
        [hidden.reshape(1, H), context.reshape(1, H)], axis=0).astype(jnp.float32)

    const2 = lambda t, ids: (0, 0)   # weight slabs: same block every step -> DMA'd once

    out_slab = pl.pallas_call(
        _attn_decoder_kernel,
        out_shape=jax.ShapeDtypeStruct((T, 1, OUT_W), jnp.float32),
        grid_spec=pltpu.PrefetchScalarGridSpec(
            num_scalar_prefetch=1,
            grid=(T,),
            in_specs=[
                # per-step (1, E) embedding-row gather driven by the prefetched ids
                pl.BlockSpec((1, 1, E), lambda t, ids: (ids[t], 0, 0)),
                pl.BlockSpec((LP, H), const2),
                pl.BlockSpec((2, H), const2),
                pl.BlockSpec(prep["w_hh_slab"].shape, const2),
                pl.BlockSpec(prep["w_big_slab"].shape, const2),
                pl.BlockSpec(prep["bias_slab"].shape, const2),
            ],
            out_specs=pl.BlockSpec((1, 1, OUT_W), lambda t, ids: (t, 0, 0)),
            scratch_shapes=[
                pltpu.VMEM((2, H), jnp.float32),          # recurrent (h, c) in f32
                pltpu.VMEM((1, E + H), jnp.float32),      # cat(embedded, attn_applied)
                pltpu.VMEM((1, 2 * H), jnp.float32),      # cat(x, h0) for fused LSTM matmul
            ],
        ),
        compiler_params=pltpu.CompilerParams(
            dimension_semantics=("arbitrary",)),          # sequential recurrence
    )(ids, prep["emb_table"], enc_pad, hc0,
      prep["w_hh_slab"], prep["w_big_slab"], prep["bias_slab"])

    log_probs = out_slab[:, 0, 0:V]                       # (T, V)
    h_all = out_slab[:, 0, V:V + H]                       # (T, H)
    c_all = out_slab[:, 0, V + H:V + 2 * H]               # (T, H)
    attn_w = out_slab[:, 0, V + 2 * H:V + 2 * H + L]      # (T, L)
    return (log_probs,
            h_all[-1].reshape(1, 1, H),
            c_all[-1].reshape(1, 1, H),
            attn_w)


def attn_decoder_forward(prep, input_ids, hidden, context, encoder_outputs):
    """Mirrors AttnDecoderRNN.forward (eval mode): the T == 1 case of the kernel."""
    log_probs, h1, c1, attn_w = attn_decoder_decode(
        prep, input_ids.reshape(1), hidden, context, encoder_outputs)
    return log_probs, h1, c1, attn_w.reshape(1, MAX_LENGTH, 1)


def _reference_forward(params, input_ids, hidden, context, encoder_outputs):
    """Pure-JAX f32 single-step reference of the torch math."""
    H, E, L = HIDDEN_SIZE, EMBEDDING_SIZE, MAX_LENGTH
    embedded = params["embedding"][input_ids.astype(jnp.int32)].reshape(1, 1, E)
    enc = encoder_outputs.reshape(-1, L, H)
    broadcast = jnp.ones_like(enc) * hidden.reshape(-1)
    cat = jnp.concatenate((enc, broadcast), axis=2)
    a = jax.nn.relu(cat @ params["attn_w"].T + params["attn_b"])
    logits = a @ params["attn2_w"].T + params["attn2_b"]
    aw = jax.nn.softmax(logits, axis=1)
    attn_applied = jnp.einsum("blo,blh->boh", aw, enc)
    x = jnp.concatenate((embedded, attn_applied), axis=2)
    x = x @ params["combine_w"].T + params["combine_b"]
    x = jax.nn.relu(x).reshape(1, H)
    h0 = hidden.reshape(1, H)
    c0 = context.reshape(1, H)
    gates = x @ params["lstm_w_ih"].T + h0 @ params["lstm_w_hh"].T \
        + params["lstm_b_ih"] + params["lstm_b_hh"]
    i_g = jax.nn.sigmoid(gates[:, 0:H])
    f_g = jax.nn.sigmoid(gates[:, H:2 * H])
    g_g = jnp.tanh(gates[:, 2 * H:3 * H])
    o_g = jax.nn.sigmoid(gates[:, 3 * H:4 * H])
    c1 = f_g * c0 + i_g * g_g
    h1 = o_g * jnp.tanh(c1)
    out = h1 @ params["out_w"].T + params["out_b"]
    return jax.nn.log_softmax(out, axis=1), h1, c1, aw


if __name__ == "__main__":
    key = jax.random.PRNGKey(0)
    k_params, k_tok, k_h, k_c, k_enc = jax.random.split(key, 5)

    params = make_params(k_params)
    prep = prepare_weights(params)          # one-time: transposes / packing / bf16 cast

    T = 8
    token_ids = jax.random.randint(k_tok, (T,), 0, VOCAB_SIZE, dtype=jnp.int32)
    hidden = 0.1 * jax.random.normal(k_h, (1, 1, HIDDEN_SIZE), jnp.float32)
    context = 0.1 * jax.random.normal(k_c, (1, 1, HIDDEN_SIZE), jnp.float32)
    encoder_outputs = 0.1 * jax.random.normal(
        k_enc, (1, MAX_LENGTH, HIDDEN_SIZE), jnp.float32)

    # multi-token decode: one pallas_call, weights resident across all T steps
    log_probs, h_fin, c_fin, attn_w = attn_decoder_decode(
        prep, token_ids, hidden, context, encoder_outputs)
    jax.block_until_ready((log_probs, h_fin, c_fin, attn_w))

    # single-step forward (module semantics) — same kernel with T == 1
    lp0, h1_s, c1_s, aw_s = attn_decoder_forward(
        prep, token_ids[0:1], hidden, context, encoder_outputs)
    jax.block_until_ready((lp0, h1_s, c1_s, aw_s))

    # ---- pure-JAX f32 teacher-forced reference loop
    ref_lp, ref_aw = [], []
    h, c = hidden, context
    for t in range(T):
        lp, h1, c1, aw = _reference_forward(
            params, token_ids[t:t + 1], h, c, encoder_outputs)
        ref_lp.append(lp)
        ref_aw.append(aw.reshape(1, MAX_LENGTH))
        h = h1.reshape(1, 1, HIDDEN_SIZE)
        c = c1.reshape(1, 1, HIDDEN_SIZE)
    ref_lp = jnp.concatenate(ref_lp, axis=0)    # (T, V)
    ref_aw = jnp.concatenate(ref_aw, axis=0)    # (T, L)

    # tolerances account for bf16 weight/LHS storage with f32 accumulation,
    # compounded over T recurrent steps
    assert jnp.allclose(log_probs, ref_lp, atol=5e-2), "log-probs mismatch"
    assert jnp.allclose(attn_w, ref_aw, atol=1e-2), "attn weights mismatch"
    assert jnp.allclose(h_fin.reshape(1, HIDDEN_SIZE),
                        h.reshape(1, HIDDEN_SIZE), atol=3e-2), "hidden mismatch"
    assert jnp.allclose(c_fin.reshape(1, HIDDEN_SIZE),
                        c.reshape(1, HIDDEN_SIZE), atol=3e-2), "context mismatch"
    assert jnp.allclose(lp0, ref_lp[0:1], atol=5e-2), "single-step forward mismatch"
    assert jnp.allclose(aw_s.reshape(1, MAX_LENGTH), ref_aw[0:1], atol=1e-2), \
        "single-step attn weights mismatch"

    print("KERNEL_OK")
</pallas_src>

<mosaic_0001>
module attributes {stable_mosaic.version = 11 : i64} {
  func.func @_attn_decoder_kernel(%arg0: i32, %arg1: memref<8xi32, #tpu.memory_space<smem>>, %arg2: memref<1x1x128xf32, #tpu.memory_space<vmem>>, %arg3: memref<16x256xbf16, #tpu.memory_space<vmem>>, %arg4: memref<2x256xf32, #tpu.memory_space<vmem>>, %arg5: memref<256x768xbf16, #tpu.memory_space<vmem>>, %arg6: memref<512x1280xbf16, #tpu.memory_space<vmem>>, %arg7: memref<1x2048xf32, #tpu.memory_space<vmem>>, %arg8: memref<1x1x896xf32, #tpu.memory_space<vmem>>, %arg9: memref<2x256xf32, #tpu.memory_space<vmem>>, %arg10: memref<1x384xf32, #tpu.memory_space<vmem>>, %arg11: memref<1x512xf32, #tpu.memory_space<vmem>>) attributes {dimension_semantics = [#tpu.dimension_semantics<arbitrary>], iteration_bounds = array<i64: 8>, scalar_prefetch = 1 : i64, scratch_operands = 3 : i64, tpu.core_type = #tpu.core_type<tc>, window_params = [{transform_indices = @transform_0, window_bounds = array<i64: 1, 1, 128>}, {pipeline_mode = #tpu.pipeline_mode<synchronous>, transform_indices = @transform_1, window_bounds = array<i64: 16, 256>}, {pipeline_mode = #tpu.pipeline_mode<synchronous>, transform_indices = @transform_2, window_bounds = array<i64: 2, 256>}, {pipeline_mode = #tpu.pipeline_mode<synchronous>, transform_indices = @transform_3, window_bounds = array<i64: 256, 768>}, {pipeline_mode = #tpu.pipeline_mode<synchronous>, transform_indices = @transform_4, window_bounds = array<i64: 512, 1280>}, {pipeline_mode = #tpu.pipeline_mode<synchronous>, transform_indices = @transform_5, window_bounds = array<i64: 1, 2048>}, {transform_indices = @transform_6, window_bounds = array<i64: 1, 1, 896>}]} {
    %c0_i32 = arith.constant 0 : i32
    %0 = arith.cmpi eq, %arg0, %c0_i32 : i32
    %1 = arith.extui %0 : i1 to i32
    %c0_i32_0 = arith.constant 0 : i32
    %2 = arith.cmpi ne, %1, %c0_i32_0 : i32
    scf.if %2 {
      %c0_67 = arith.constant 0 : index
      %c0_68 = arith.constant 0 : index
      %112 = vector.load %arg4[%c0_67, %c0_68] : memref<2x256xf32, #tpu.memory_space<vmem>>, vector<2x256xf32>
      %c0_69 = arith.constant 0 : index
      %c0_70 = arith.constant 0 : index
      %113 = vector.load %arg9[%c0_69, %c0_70] : memref<2x256xf32, #tpu.memory_space<vmem>>, vector<2x256xf32>
      tpu.vector_store %arg9[%c0_69, %c0_70], %112 {strides = array<i32>} : memref<2x256xf32, #tpu.memory_space<vmem>>, vector<2x256xf32>,
    } else {
    }
    %c0 = arith.constant 0 : index
    %c0_1 = arith.constant 0 : index
    %3 = vector.load %arg9[%c0, %c0_1] : memref<2x256xf32, #tpu.memory_space<vmem>>, vector<1x256xf32>
    %c1 = arith.constant 1 : index
    %c0_2 = arith.constant 0 : index
    %4 = vector.load %arg9[%c1, %c0_2] : memref<2x256xf32, #tpu.memory_space<vmem>>, vector<1x256xf32>
    %5 = arith.truncf %3 : vector<1x256xf32> to vector<1x256xbf16>
    %c0_3 = arith.constant 0 : index
    %c0_4 = arith.constant 0 : index
    %6 = vector.load %arg3[%c0_3, %c0_4] : memref<16x256xbf16, #tpu.memory_space<vmem>>, vector<16x256xbf16>
    %c0_5 = arith.constant 0 : index
    %c0_6 = arith.constant 0 : index
    %7 = vector.load %arg5[%c0_5, %c0_6] : memref<256x768xbf16, #tpu.memory_space<vmem>>, vector<256x256xbf16>
    %c0_7 = arith.constant 0 : index
    %c256 = arith.constant 256 : index
    %8 = vector.load %arg5[%c0_7, %c256] : memref<256x768xbf16, #tpu.memory_space<vmem>>, vector<256x256xbf16>
    %c0_8 = arith.constant 0 : index
    %c512 = arith.constant 512 : index
    %9 = vector.load %arg5[%c0_8, %c512] : memref<256x768xbf16, #tpu.memory_space<vmem>>, vector<256x256xbf16>
    %c0_9 = arith.constant 0 : index
    %c0_10 = arith.constant 0 : index
    %10 = vector.load %arg6[%c0_9, %c0_10] : memref<512x1280xbf16, #tpu.memory_space<vmem>>, vector<384x256xbf16>
    %c0_11 = arith.constant 0 : index
    %c256_12 = arith.constant 256 : index
    %11 = vector.load %arg6[%c0_11, %c256_12] : memref<512x1280xbf16, #tpu.memory_space<vmem>>, vector<512x1024xbf16>
    %c0_13 = arith.constant 0 : index
    %c0_14 = arith.constant 0 : index
    %12 = vector.load %arg7[%c0_13, %c0_14] : memref<1x2048xf32, #tpu.memory_space<vmem>>, vector<1x256xf32>
    %c0_15 = arith.constant 0 : index
    %c256_16 = arith.constant 256 : index
    %13 = vector.load %arg7[%c0_15, %c256_16] : memref<1x2048xf32, #tpu.memory_space<vmem>>, vector<1x256xf32>
    %c0_17 = arith.constant 0 : index
    %c512_18 = arith.constant 512 : index
    %14 = vector.load %arg7[%c0_17, %c512_18] : memref<1x2048xf32, #tpu.memory_space<vmem>>, vector<1x256xf32>
    %c0_19 = arith.constant 0 : index
    %c768 = arith.constant 768 : index
    %15 = vector.load %arg7[%c0_19, %c768] : memref<1x2048xf32, #tpu.memory_space<vmem>>, vector<1x256xf32>
    %c0_20 = arith.constant 0 : index
    %c1024 = arith.constant 1024 : index
    %16 = vector.load %arg7[%c0_20, %c1024] : memref<1x2048xf32, #tpu.memory_space<vmem>>, vector<1x1024xf32>
    %c0_21 = arith.constant 0 : index
    %c0_22 = arith.constant 0 : index
    %c0_23 = arith.constant 0 : index
    %17 = vector.load %arg2[%c0_21, %c0_22, %c0_23] : memref<1x1x128xf32, #tpu.memory_space<vmem>>, vector<1x1x128xf32>
    %18 = vector.shape_cast %17 : vector<1x1x128xf32> to vector<1x128xf32>
    %cst = arith.constant dense<0.000000e+00> : vector<16x256xf32>
    %19 = tpu.matmul %6, %7, %cst {dimension_numbers = #tpu.dot_dimension_numbers<[1], [0], [0], [1], [0, 0, 1, 1], [], []>} : vector<16x256xbf16>, vector<256x256xbf16>, vector<16x256xf32> -> vector<16x256xf32>
    %cst_24 = arith.constant dense<0.000000e+00> : vector<1x256xf32>
    %20 = tpu.matmul %5, %8, %cst_24 {dimension_numbers = #tpu.dot_dimension_numbers<[1], [0], [0], [1], [0, 0, 1, 1], [], []>} : vector<1x256xbf16>, vector<256x256xbf16>, vector<1x256xf32> -> vector<1x256xf32>
    %21 = vector.broadcast %20 : vector<1x256xf32> to vector<16x256xf32>
    %22 = arith.addf %19, %21 : vector<16x256xf32>
    %23 = vector.broadcast %12 : vector<1x256xf32> to vector<16x256xf32>
    %24 = arith.addf %22, %23 : vector<16x256xf32>
    %cst_25 = arith.constant 0.000000e+00 : f32
    %25 = vector.broadcast %cst_25 : f32 to vector<16x256xf32>
    %26 = arith.maximumf %24, %25 : vector<16x256xf32>
    %27 = arith.truncf %15 : vector<1x256xf32> to vector<1x256xbf16>
    %28 = arith.truncf %26 : vector<16x256xf32> to vector<16x256xbf16>
    %cst_26 = arith.constant dense<0.000000e+00> : vector<1x16xf32>
    %29 = tpu.matmul %27, %28, %cst_26 {dimension_numbers = #tpu.dot_dimension_numbers<[1], [1], [0], [0], [0, 0, 1, 0], [], []>} : vector<1x256xbf16>, vector<16x256xbf16>, vector<1x16xf32> -> vector<1x16xf32>
    %30 = tpu.iota {dimensions = array<i32: 1>} : vector<1x16xi32>
    %c15_i32 = arith.constant 15 : i32
    %31 = vector.broadcast %c15_i32 : i32 to vector<1x16xi32>
    %32 = arith.cmpi slt, %30, %31 : vector<1x16xi32>
    %cst_27 = arith.constant 0xFF800000 : f32
    %33 = vector.broadcast %cst_27 : f32 to vector<1x16xf32>
    %34 = arith.select %32, %29, %33 : vector<1x16xi1>, vector<1x16xf32>
    %cst_28 = arith.constant dense<0xFF800000> : vector<1xf32>
    %35 = vector.multi_reduction <maximumf>, %34, %cst_28 [1] : vector<1x16xf32> to vector<1xf32>
    %36 = vector.shape_cast %35 : vector<1xf32> to vector<1x1xf32>
    %37 = vector.broadcast %36 : vector<1x1xf32> to vector<1x16xf32>
    %38 = arith.subf %34, %37 : vector<1x16xf32>
    %39 = math.exp %38 : vector<1x16xf32>
    %cst_29 = arith.constant dense<0.000000e+00> : vector<1xf32>
    %40 = vector.multi_reduction <add>, %39, %cst_29 [1] : vector<1x16xf32> to vector<1xf32>
    %41 = vector.shape_cast %40 : vector<1xf32> to vector<1x1xf32>
    %42 = vector.broadcast %41 : vector<1x1xf32> to vector<1x16xf32>
    %43 = arith.divf %39, %42 : vector<1x16xf32>
    %44 = arith.truncf %43 : vector<1x16xf32> to vector<1x16xbf16>
    %cst_30 = arith.constant dense<0.000000e+00> : vector<1x256xf32>
    %45 = tpu.matmul %44, %6, %cst_30 {dimension_numbers = #tpu.dot_dimension_numbers<[1], [0], [0], [1], [0, 0, 1, 1], [], []>} : vector<1x16xbf16>, vector<16x256xbf16>, vector<1x256xf32> -> vector<1x256xf32>
    %c0_31 = arith.constant 0 : index
    %c0_32 = arith.constant 0 : index
    %46 = vector.load %arg10[%c0_31, %c0_32] : memref<1x384xf32, #tpu.memory_space<vmem>>, vector<1x128xf32>
    tpu.vector_store %arg10[%c0_31, %c0_32], %18 {strides = array<i32>} : memref<1x384xf32, #tpu.memory_space<vmem>>, vector<1x128xf32>,
    %c0_33 = arith.constant 0 : index
    %c128 = arith.constant 128 : index
    %47 = vector.load %arg10[%c0_33, %c128] : memref<1x384xf32, #tpu.memory_space<vmem>>, vector<1x256xf32>
    tpu.vector_store %arg10[%c0_33, %c128], %45 {strides = array<i32>} : memref<1x384xf32, #tpu.memory_space<vmem>>, vector<1x256xf32>,
    %c0_34 = arith.constant 0 : index
    %c0_35 = arith.constant 0 : index
    %48 = vector.load %arg10[%c0_34, %c0_35] : memref<1x384xf32, #tpu.memory_space<vmem>>, vector<1x384xf32>
    %49 = arith.truncf %48 : vector<1x384xf32> to vector<1x384xbf16>
    %cst_36 = arith.constant dense<0.000000e+00> : vector<1x256xf32>
    %50 = tpu.matmul %49, %10, %cst_36 {dimension_numbers = #tpu.dot_dimension_numbers<[1], [0], [0], [1], [0, 0, 1, 1], [], []>} : vector<1x384xbf16>, vector<384x256xbf16>, vector<1x256xf32> -> vector<1x256xf32>
    %51 = arith.addf %50, %13 : vector<1x256xf32>
    %cst_37 = arith.constant 0.000000e+00 : f32
    %52 = vector.broadcast %cst_37 : f32 to vector<1x256xf32>
    %53 = arith.maximumf %51, %52 : vector<1x256xf32>
    %c0_38 = arith.constant 0 : index
    %c0_39 = arith.constant 0 : index
    %54 = vector.load %arg11[%c0_38, %c0_39] : memref<1x512xf32, #tpu.memory_space<vmem>>, vector<1x256xf32>
    tpu.vector_store %arg11[%c0_38, %c0_39], %53 {strides = array<i32>} : memref<1x512xf32, #tpu.memory_space<vmem>>, vector<1x256xf32>,
    %c0_40 = arith.constant 0 : index
    %c256_41 = arith.constant 256 : index
    %55 = vector.load %arg11[%c0_40, %c256_41] : memref<1x512xf32, #tpu.memory_space<vmem>>, vector<1x256xf32>
    tpu.vector_store %arg11[%c0_40, %c256_41], %3 {strides = array<i32>} : memref<1x512xf32, #tpu.memory_space<vmem>>, vector<1x256xf32>,
    %c0_42 = arith.constant 0 : index
    %c0_43 = arith.constant 0 : index
    %56 = vector.load %arg11[%c0_42, %c0_43] : memref<1x512xf32, #tpu.memory_space<vmem>>, vector<1x512xf32>
    %57 = arith.truncf %56 : vector<1x512xf32> to vector<1x512xbf16>
    %cst_44 = arith.constant dense<0.000000e+00> : vector<1x1024xf32>
    %58 = tpu.matmul %57, %11, %cst_44 {dimension_numbers = #tpu.dot_dimension_numbers<[1], [0], [0], [1], [0, 0, 1, 1], [], []>} : vector<1x512xbf16>, vector<512x1024xbf16>, vector<1x1024xf32> -> vector<1x1024xf32>
    %59 = arith.addf %58, %16 : vector<1x1024xf32>
    %60 = vector.extract_strided_slice %59 {offsets = [0, 0], sizes = [1, 256], strides = [1, 1]} : vector<1x1024xf32> to vector<1x256xf32>
    %61 = arith.negf %60 : vector<1x256xf32>
    %62 = math.exp %61 : vector<1x256xf32>
    %cst_45 = arith.constant 1.000000e+00 : f32
    %63 = vector.broadcast %cst_45 : f32 to vector<1x256xf32>
    %64 = arith.addf %63, %62 : vector<1x256xf32>
    %65 = arith.divf %63, %64 : vector<1x256xf32>
    %66 = vector.extract_strided_slice %59 {offsets = [0, 256], sizes = [1, 256], strides = [1, 1]} : vector<1x1024xf32> to vector<1x256xf32>
    %67 = arith.negf %66 : vector<1x256xf32>
    %68 = math.exp %67 : vector<1x256xf32>
    %cst_46 = arith.constant 1.000000e+00 : f32
    %69 = vector.broadcast %cst_46 : f32 to vector<1x256xf32>
    %70 = arith.addf %69, %68 : vector<1x256xf32>
    %71 = arith.divf %69, %70 : vector<1x256xf32>
    %72 = vector.extract_strided_slice %59 {offsets = [0, 512], sizes = [1, 256], strides = [1, 1]} : vector<1x1024xf32> to vector<1x256xf32>
    %73 = math.tanh %72 : vector<1x256xf32>
    %74 = vector.extract_strided_slice %59 {offsets = [0, 768], sizes = [1, 256], strides = [1, 1]} : vector<1x1024xf32> to vector<1x256xf32>
    %75 = arith.negf %74 : vector<1x256xf32>
    %76 = math.exp %75 : vector<1x256xf32>
    %cst_47 = arith.constant 1.000000e+00 : f32
    %77 = vector.broadcast %cst_47 : f32 to vector<1x256xf32>
    %78 = arith.addf %77, %76 : vector<1x256xf32>
    %79 = arith.divf %77, %78 : vector<1x256xf32>
    %80 = arith.mulf %71, %4 : vector<1x256xf32>
    %81 = arith.mulf %65, %73 : vector<1x256xf32>
    %82 = arith.addf %80, %81 : vector<1x256xf32>
    %83 = math.tanh %82 : vector<1x256xf32>
    %84 = arith.mulf %79, %83 : vector<1x256xf32>
    %c0_48 = arith.constant 0 : index
    %c0_49 = arith.constant 0 : index
    %85 = vector.load %arg9[%c0_48, %c0_49] : memref<2x256xf32, #tpu.memory_space<vmem>>, vector<1x256xf32>
    tpu.vector_store %arg9[%c0_48, %c0_49], %84 {strides = array<i32>} : memref<2x256xf32, #tpu.memory_space<vmem>>, vector<1x256xf32>,
    %c1_50 = arith.constant 1 : index
    %c0_51 = arith.constant 0 : index
    %86 = vector.load %arg9[%c1_50, %c0_51] : memref<2x256xf32, #tpu.memory_space<vmem>>, vector<1x256xf32>
    tpu.vector_store %arg9[%c1_50, %c0_51], %82 {strides = array<i32>} : memref<2x256xf32, #tpu.memory_space<vmem>>, vector<1x256xf32>,
    %87 = arith.truncf %84 : vector<1x256xf32> to vector<1x256xbf16>
    %cst_52 = arith.constant dense<0.000000e+00> : vector<1x256xf32>
    %88 = tpu.matmul %87, %9, %cst_52 {dimension_numbers = #tpu.dot_dimension_numbers<[1], [0], [0], [1], [0, 0, 1, 1], [], []>} : vector<1x256xbf16>, vector<256x256xbf16>, vector<1x256xf32> -> vector<1x256xf32>
    %89 = arith.addf %88, %14 : vector<1x256xf32>
    %cst_53 = arith.constant dense<0xFF800000> : vector<1xf32>
    %90 = vector.multi_reduction <maximumf>, %89, %cst_53 [1] : vector<1x256xf32> to vector<1xf32>
    %91 = vector.shape_cast %90 : vector<1xf32> to vector<1x1xf32>
    %92 = vector.broadcast %91 : vector<1x1xf32> to vector<1x256xf32>
    %93 = arith.subf %89, %92 : vector<1x256xf32>
    %94 = math.exp %93 : vector<1x256xf32>
    %cst_54 = arith.constant dense<0.000000e+00> : vector<1xf32>
    %95 = vector.multi_reduction <add>, %94, %cst_54 [1] : vector<1x256xf32> to vector<1xf32>
    %96 = vector.shape_cast %95 : vector<1xf32> to vector<1x1xf32>
    %97 = math.log %96 : vector<1x1xf32>
    %98 = vector.broadcast %97 : vector<1x1xf32> to vector<1x256xf32>
    %99 = arith.subf %93, %98 : vector<1x256xf32>
    %c0_55 = arith.constant 0 : index
    %c0_56 = arith.constant 0 : index
    %c0_57 = arith.constant 0 : index
    %100 = vector.load %arg8[%c0_55, %c0_56, %c0_57] : memref<1x1x896xf32, #tpu.memory_space<vmem>>, vector<1x1x256xf32>
    %101 = vector.shape_cast %100 : vector<1x1x256xf32> to vector<1x256xf32>
    %102 = vector.shape_cast %99 : vector<1x256xf32> to vector<1x1x256xf32>
    tpu.vector_store %arg8[%c0_55, %c0_56, %c0_57], %102 {strides = array<i32>} : memref<1x1x896xf32, #tpu.memory_space<vmem>>, vector<1x1x256xf32>,
    %c0_58 = arith.constant 0 : index
    %c0_59 = arith.constant 0 : index
    %c256_60 = arith.constant 256 : index
    %103 = vector.load %arg8[%c0_58, %c0_59, %c256_60] : memref<1x1x896xf32, #tpu.memory_space<vmem>>, vector<1x1x256xf32>
    %104 = vector.shape_cast %103 : vector<1x1x256xf32> to vector<1x256xf32>
    %105 = vector.shape_cast %84 : vector<1x256xf32> to vector<1x1x256xf32>
    tpu.vector_store %arg8[%c0_58, %c0_59, %c256_60], %105 {strides = array<i32>} : memref<1x1x896xf32, #tpu.memory_space<vmem>>, vector<1x1x256xf32>,
    %c0_61 = arith.constant 0 : index
    %c0_62 = arith.constant 0 : index
    %c512_63 = arith.constant 512 : index
    %106 = vector.load %arg8[%c0_61, %c0_62, %c512_63] : memref<1x1x896xf32, #tpu.memory_space<vmem>>, vector<1x1x256xf32>
    %107 = vector.shape_cast %106 : vector<1x1x256xf32> to vector<1x256xf32>
    %108 = vector.shape_cast %82 : vector<1x256xf32> to vector<1x1x256xf32>
    tpu.vector_store %arg8[%c0_61, %c0_62, %c512_63], %108 {strides = array<i32>} : memref<1x1x896xf32, #tpu.memory_space<vmem>>, vector<1x1x256xf32>,
    %c0_64 = arith.constant 0 : index
    %c0_65 = arith.constant 0 : index
    %c768_66 = arith.constant 768 : index
    %109 = vector.load %arg8[%c0_64, %c0_65, %c768_66] : memref<1x1x896xf32, #tpu.memory_space<vmem>>, vector<1x1x16xf32>
    %110 = vector.shape_cast %109 : vector<1x1x16xf32> to vector<1x16xf32>
    %111 = vector.shape_cast %43 : vector<1x16xf32> to vector<1x1x16xf32>
    tpu.vector_store %arg8[%c0_64, %c0_65, %c768_66], %111 {strides = array<i32>} : memref<1x1x896xf32, #tpu.memory_space<vmem>>, vector<1x1x16xf32>,
    return
  }
  func.func @transform_0(%arg0: i32, %arg1: memref<8xi32, #tpu.memory_space<smem>>) -> (i32, i32, i32) {
    %0 = arith.index_cast %arg0 : i32 to index
    %1 = memref.load %arg1[%0] : memref<8xi32, #tpu.memory_space<smem>>
    %c0_i32 = arith.constant 0 : i32
    %c0_i32_0 = arith.constant 0 : i32
    %c0_i32_1 = arith.constant 0 : i32
    return %1, %c0_i32, %c0_i32_0 : i32, i32, i32
  }
  func.func @transform_1(%arg0: i32, %arg1: memref<8xi32, #tpu.memory_space<smem>>) -> (i32, i32) {
    %c0_i32 = arith.constant 0 : i32
    %c0_i32_0 = arith.constant 0 : i32
    %c0_i32_1 = arith.constant 0 : i32
    return %c0_i32, %c0_i32_0 : i32, i32
  }
  func.func @transform_2(%arg0: i32, %arg1: memref<8xi32, #tpu.memory_space<smem>>) -> (i32, i32) {
    %c0_i32 = arith.constant 0 : i32
    %c0_i32_0 = arith.constant 0 : i32
    %c0_i32_1 = arith.constant 0 : i32
    return %c0_i32, %c0_i32_0 : i32, i32
  }
  func.func @transform_3(%arg0: i32, %arg1: memref<8xi32, #tpu.memory_space<smem>>) -> (i32, i32) {
    %c0_i32 = arith.constant 0 : i32
    %c0_i32_0 = arith.constant 0 : i32
    %c0_i32_1 = arith.constant 0 : i32
    return %c0_i32, %c0_i32_0 : i32, i32
  }
  func.func @transform_4(%arg0: i32, %arg1: memref<8xi32, #tpu.memory_space<smem>>) -> (i32, i32) {
    %c0_i32 = arith.constant 0 : i32
    %c0_i32_0 = arith.constant 0 : i32
    %c0_i32_1 = arith.constant 0 : i32
    return %c0_i32, %c0_i32_0 : i32, i32
  }
  func.func @transform_5(%arg0: i32, %arg1: memref<8xi32, #tpu.memory_space<smem>>) -> (i32, i32) {
    %c0_i32 = arith.constant 0 : i32
    %c0_i32_0 = arith.constant 0 : i32
    %c0_i32_1 = arith.constant 0 : i32
    return %c0_i32, %c0_i32_0 : i32, i32
  }
  func.func @transform_6(%arg0: i32, %arg1: memref<8xi32, #tpu.memory_space<smem>>) -> (i32, i32, i32) {
    %c0_i32 = arith.constant 0 : i32
    %c0_i32_0 = arith.constant 0 : i32
    %c0_i32_1 = arith.constant 0 : i32
    return %arg0, %c0_i32, %c0_i32_0 : i32, i32, i32
  }
}

</mosaic_0001>

<bundles_post_ra>
// kernel: attn_decoder_decode.1
= control target key start
LH: loop header
LB: loop body
LE: loop exit
PB: predicated region body
PF: predicated region fallthrough
CT: control target
= control target key end

     0   :  { %s5137_s24 = smov [#allocation6]   ;;  %s5481_s0 = inlined_call_operand.hbm [shape: s32[8], index: 0, kind: input, shape index: {}]   ;;  %s5482_s1 = inlined_call_operand.hbm [shape: f32[128,1,128], index: 1, kind: input, shape index: {}]   ;;  %s5483_s2 = inlined_call_operand.vmem [shape: bf16[16,256], index: 2, kind: input, shape index: {}]   ;;  %s5484_s3 = inlined_call_operand.vmem [shape: f32[2,256], index: 3, kind: input, shape index: {}]   ;;  %s5485_s4 = inlined_call_operand.hbm [shape: bf16[256,768], index: 4, kind: input, shape index: {}]   ;;  %s5486_s5 = inlined_call_operand.hbm [shape: bf16[512,1280], index: 5, kind: input, shape index: {}]   ;;  %s5487_s6 = inlined_call_operand.hbm [shape: f32[1,2048], index: 6, kind: input, shape index: {}]   ;;  %s5488_s7 = inlined_call_operand.vmem [shape: f32[8,1,896], index: 7, kind: output, shape index: {}]  }
   0x1   :  { %13 = dma.hbm_to_smem %s5481_s0, 16, %s5137_s24, [#allocation5] }
   0x2   :  { %5107 = dma.done.wait [#allocation5], 16 }
   0x3   :  { %5108 = vsyncadd [#allocation5], 4294967280 }
   0x4   :  { %15 = sfence }
   0x5   :  { %16 = vsyncpa [#allocation8], 0 }
   0x6   :  { %18 = vsyncpa [#allocation8 + $0x1], 0 }
   0x7   :  { %19 = vsyncpa [#allocation10], 0 }
   0x8   :  { %20 = vsyncpa [#allocation13], 0  ;;  %s5191_s27 = smov 0   ;;  %s5193_s28 = smov 0  }
   0x9   :  { %s5195_s29 = smov 0   ;;  %s5197_s30 = smov 0  }
   0xa LB: > { %s5210_s0 = sadd.s32 4294967295, %s5135_s30   ;;  %p48_p0 = scmp.ne.s32.totalorder %s5127_s28, %s5123_s27  ;;  %s5135_s30 = sphi %s5197_s30, %s5509_s30   ;;  %s5131_s29 = sphi %s5195_s29, %s5508_s29   ;;  %s5127_s28 = sphi %s5193_s28, %s5507_s28   ;;  %s5123_s27 = sphi %s5191_s27, %s5506_s27  }
   0xb   : > { %p5489_p1 = scmp.eq.s32.totalorder %s5210_s0, 0  ;;  %p3828_p2 = scmp.ge.s32.totalorder %s5135_s30, 1 }
   0xc   : > { %p190_p3 = scmp.lt.s32.totalorder %s5135_s30, 9  ;;  %s5138_s10 = smov [#allocation9]  }
   0xd   : > { %p5219_p5 = por %p5489_p1, %p48_p0  ;;  %s208_s11 = sshll.u32 %s5138_s10, 4  ;;  %s209_s11 = int_to_ptr.vmem [resolvable:$true] %s208_s11 }
   0xe   : > { %p5223_p6 = pnand %p3828_p2, %p190_p3  ;;  %s5139_s13 = smov [#allocation11]  }
   0xf   : > { %s5492_s8 = scalar_select %p5219_p5, 1, 0 }
  0x10   : > { %s5493_s9 = scalar_select %p5223_p6, 1, 0 }
  0x11   : > { %p4267_p7 = pneg %p5223_p6  ;;  %s221_s14 = sshll.u32 %s5139_s13, 4  ;;  %s222_s14 = int_to_ptr.vmem [resolvable:$true] %s221_s14 }
  0x12   : > { %s4996_s15 = scalar_lea.vmem %s209_s11, 12288  ;;  %p5004_p13 = scmp.lt.s32.totalorder %s209_s11, %s209_s11 }
  0x13   : > { %p5231_p8 = pnand %p4267_p7, %p5489_p1  ;;  %p4997_p10 = scmp.ne.s32.totalorder %s209_s11, %s4996_s15 }
  0x14   : > { %p5005_p0 = scmp.lt.s32.totalorder %s4996_s15, %s4996_s15 }
  0x15   : > { %p4987_p9 = pneg %p5231_p8 }
  0x16   : > { %p5006_p2 = por %p5005_p0, %p5004_p13 }
  0x17   : > { %p4999_p11 = pnand %p4997_p10, %p4987_p9 }
  0x19   : > { %p5000_p12 = pneg %p4999_p11 }
  0x1b   : > { %p5007_p3 = pnand %p5006_p2, %p5000_p12 }
  0x1d   : > { %5010 = shalt.err (!%p5007_p3)
}
  0x1e   : > { %s5140_s16 = smov 384   ;;  %s5141_s17 = smov 24  }
  0x1f   : > { %4270 = dma.hbm_to_vmem [thread:$0]  (!%p5231_p8), %s5485_s4, 12288, %s209_s11, [#allocation10], %s5140_s16, %s5140_s16, %s5141_s17  }
  0x20   : > { %s5022_s20 = scalar_lea.vmem %s222_s14, 40960  ;;  %p5030_p4 = scmp.lt.s32.totalorder %s222_s14, %s222_s14 }
  0x21   : > { %p5023_p7 = scmp.ne.s32.totalorder %s222_s14, %s5022_s20  ;;  %p5031_p1 = scmp.lt.s32.totalorder %s5022_s20, %s5022_s20 }
  0x23   : > { %p5025_p10 = pnand %p5023_p7, %p4987_p9  ;;  %p5032_p13 = por %p5031_p1, %p5030_p4 }
  0x25   : > { %p5026_p11 = pneg %p5025_p10 }
  0x27   : > { %p5033_p12 = pnand %p5032_p13, %p5026_p11 }
  0x29   : > { %5036 = shalt.err (!%p5033_p12)
}
  0x2a   : > { %s5142_s21 = smov 640   ;;  %s5143_s22 = smov 40  }
  0x2b   : > { %4273 = dma.hbm_to_vmem [thread:$0]  (!%p5231_p8), %s5486_s5, 40960, %s222_s14, [#allocation10], %s5142_s21, %s5142_s21, %s5143_s22  }
  0x2c   : > { %s5144_s25 = smov [#allocation12]   ;;  %s5254_s27 = sadd.s32 1, %s5135_s30  }
  0x2d   : > { %s235_s26 = sshll.u32 %s5144_s25, 4  ;;  %s236_s26 = int_to_ptr.vmem [resolvable:$true] %s235_s26 }
  0x2e   : > { %s5048_s10 = scalar_lea.vmem %s236_s26, 256  ;;  %p5056_p2 = scmp.lt.s32.totalorder %s236_s26, %s236_s26 }
  0x2f   : > { %p5049_p0 = scmp.ne.s32.totalorder %s236_s26, %s5048_s10  ;;  %p5057_p3 = scmp.lt.s32.totalorder %s5048_s10, %s5048_s10 }
  0x31   : > { %p5051_p1 = pnand %p5049_p0, %p4987_p9  ;;  %p5058_p7 = por %p5057_p3, %p5056_p2 }
  0x33   : > { %p5052_p4 = pneg %p5051_p1 }
  0x35   : > { %p5059_p10 = pnand %p5058_p7, %p5052_p4 }
  0x37   : > { %5062 = shalt.err (!%p5059_p10)
}
  0x38   : > { %4276 = dma.hbm_to_vmem [thread:$0]  (!%p5231_p8), %s5487_s6, 256, %s236_s26, [#allocation13]  }
  0x39   : > { %s30_s14 = sld [smem:[#allocation6 + %s5135_s30]]  ;;  %p42_p9 = scmp.ne.s32.totalorder %s5131_s29, %s5127_s28 }
  0x3a   : > { %s31_s15 = sld [smem:[#allocation6 + %s5254_s27]]  ;;  %p43_p11 = scmp.eq.s32.totalorder %s5135_s30, 0 }
  0x3b   : > { %s35_s12 = sadd.s32 1, %s5131_s29  ;;  %p4286_p12 = scmp.lt.s32.totalorder %s5135_s30, 8 }
  0x3c   : > { %p44_p13 = por %p43_p11, %p42_p9  ;;  %s246_s18 = sand.u32 1, %s5131_s29  }
  0x3d   : > { %s249_s22 = scalar_lea.vmem [#allocation7], %s246_s18  ;;  %s247_s11 = scalar_lea.sflag [#allocation8], %s246_s18 }
  0x3e   : > { %s4257_s16 = scalar_select %p44_p13, [#allocation6], [#allocation14] }
  0x3f   : > { %s5511_s30 = smov (!%p44_p13, %s5135_s30), 0  ;;  %p5276_p1 = pnand %p4286_p12, %p44_p13 }
  0x40   : > { %s32_s17 = ssub.s32 %s30_s14, %s31_s15  ;;  %s5513_s16 = smov (!%p4286_p12, %s4257_s16), [#allocation15] }
  0x41   : > { %p33_p0 = scmp.eq.s32.totalorder %s32_s17, 0  ;;  %s5515_s30 = smov (!%p4286_p12, %s5511_s30), 0 }
  0x42   : > { %s250_s21 = sld [smem:[%s5513_s16 + %s5515_s30]]  ;;  %s257_s23 = sshll.u32 %s249_s22, 4  ;;  %s5280_s23 = int_to_ptr.vmem [resolvable:$true] %s257_s23 }
  0x43   : > { %s5274_s19 = scalar_select %p33_p0, %s5131_s29, %s35_s12  }
  0x44   : > { %p5065_p4 = pneg %p5276_p1  ;;  %s5068_s30 = scalar_lea.hbm %s5482_s1, 2048 }
  0x48   : > { %s3833_s24 = sshll.u32 %s250_s21, 4 }
  0x49   : > { %s255_s10 = scalar_lea.hbm %s5482_s1, %s3833_s24 }
  0x4a   : > { %s5063_s13 = scalar_lea.hbm %s255_s10, 16  ;;  %p5069_p7 = scmp.lt.s32.totalorder %s255_s10, %s5482_s1 }
  0x4b   : > { %p5064_p8 = scmp.ne.s32.totalorder %s255_s10, %s5063_s13  ;;  %p5070_p10 = scmp.lt.s32.totalorder %s5068_s30, %s5063_s13 }
  0x4d   : > { %p5066_p2 = pnand %p5065_p4, %p5064_p8  ;;  %p5071_p9 = por %p5070_p10, %p5069_p7 }
  0x4f   : > { %p5067_p3 = pneg %p5066_p2 }
  0x51   : > { %p5072_p11 = pnand %p5071_p9, %p5067_p3 }
  0x53   : > { %5075 = shalt.err (!%p5072_p11)
}
  0x54   : > { %s5076_s17 = scalar_lea.vmem %s5280_s23, 16  ;;  %s5145_s18 = smov [#allocation7]  }
  0x55   : > { %p5077_p13 = scmp.ne.s32.totalorder %s5280_s23, %s5076_s17  ;;  %s5081_s21 = sshll.u32 %s5145_s18, 4  ;;  %s5082_s21 = int_to_ptr.vmem [resolvable:$false] %s5081_s21 }
  0x56   : > { %s5083_s22 = scalar_lea.vmem %s5082_s21, 32  ;;  %p5084_p8 = scmp.lt.s32.totalorder %s5280_s23, %s5082_s21 }
  0x57   : > { %p5079_p12 = pnand %p5077_p13, %p5065_p4  ;;  %p5085_p2 = scmp.lt.s32.totalorder %s5083_s22, %s5076_s17 }
  0x59   : > { %p5080_p0 = pneg %p5079_p12  ;;  %p5086_p5 = por %p5085_p2, %p5084_p8 }
  0x5b   : > { %p5087_p6 = pnand %p5086_p5, %p5080_p0 }
  0x5d   : > { %5090 = shalt.err (!%p5087_p6)
}
  0x5e   : > { %4282 = dma.hbm_to_vmem [thread:$0]  (!%p5276_p1), %s255_s10, 16, %s5280_s23, %s247_s11  }
  0x5f   : > { %p5496_p3 = scmp.ne.s32.totalorder %s5493_s9, 0 }
  0x60   : > { %s268_s24 = sand.u32 (!%p5496_p3), 1, %s5127_s28   ;;  %p5497_p4 = scmp.ne.s32.totalorder (!%p5496_p3), %s5492_s8, 0 }
  0x61   : > { %266 = sbr.rel (%p5496_p3) target bundleno = 2293 (0x8f5), region = 44  ;;  %s269_s25 = scalar_lea.sflag (!%p5496_p3), [#allocation8], %s268_s24 }
  0x62   : > { %s5302_s26 = scalar_lea.vmem (!%p5496_p3), [#allocation7], %s268_s24 }
  0x66   : > { %5110 = dma.done.wait (%p5497_p4), %s269_s25, 16  }
  0x67   : > { %5112 = vsyncadd (%p5497_p4), %s269_s25, 4294967280  ;;  %p5498_p5 = scmp.eq.s32.totalorder %s5210_s0, 0 }
  0x69   : > { %5114 = dma.done.wait (%p5498_p5), [#allocation10], 53248   ;;  %p5499_p6 = pmov %p5498_p5 }
  0x6a   : > { %p5500_p1 = pmov %p5498_p5 }
  0x6b   : > { %5116 = vsyncadd (%p5499_p6), [#allocation10], 4294914048 }
  0x6c   : > { %5118 = dma.done.wait (%p5500_p1), [#allocation13], 256   ;;  %p5501_p7 = pmov %p5500_p1 }
  0x6d   : > { %p311_p10 = scmp.lt.s32.totalorder %s5210_s0, 7  ;;  %p5502_p9 = scmp.ne.s32.totalorder %s5210_s0, 0 }
  0x6e   : > { %5120 = vsyncadd (%p5501_p7), [#allocation13], 4294967040 }
  0x6f   : > { %s312_s9 = scalar_select %p311_p10, %s5210_s0, 7 }
  0x70   : > { %319 = sbr.rel (%p5502_p9) target bundleno = 119 (0x77), region = 64 }
  0x71   : > { %s4250_s20 = smul.u32 7, %s312_s9 }
  0x73   : > { %s5321_s10 = scalar_lea.vmem %s5488_s7, %s4250_s20 }
  0x75   : > { %v320_v0 = vld [vmem:[%s5484_s3] sm:$0xf] }
  0x76   : > { %321 = vst [vmem:[#allocation2] sm:$0xf] %v320_v0 }
  0x77 PF: > { %v4332_v1 = vld [vmem:[#allocation9 + $0x15c] ss:$24 sps:$4 sm:$0xff]   ;;  %v4336_v3 = vld [vmem:[#allocation9 + $0x158] ss:$24 sps:$4 sm:$0xff]   ;;  %v4338_v5 = vld [vmem:[#allocation9 + $0x12c] ss:$24 sps:$4 sm:$0xff]   ;;  %v326_v38 = vlaneseq }
  0x78   : > { %v4334_v2 = vld [vmem:[#allocation9 + $0x154] ss:$24 sps:$4 sm:$0xff]   ;;  %906 = vmatprep.subr.bf16.mxu0 %v4332_v1  ;;  %v4337_v4 = vld [vmem:[#allocation9 + $0x150] ss:$24 sps:$4 sm:$0xff]   ;;  %v4340_v6 = vld [vmem:[#allocation9 + $0x124] ss:$24 sps:$4 sm:$0xff]  }
  0x79   : > { %1125 = vmatprep.subr.bf16.mxu1 %v4334_v2  ;;  %907 = vmatpush1.bf16.msra.mxu0 %v4336_v3  ;;  %v4342_v7 = vld [vmem:[#allocation9 + $0x128] ss:$24 sps:$4 sm:$0xff]   ;;  %v4344_v9 = vld [vmem:[#allocation9 + $0xfc] ss:$24 sps:$4 sm:$0xff]   ;;  %v4348_v11 = vld [vmem:[#allocation9 + $0xf8] ss:$24 sps:$4 sm:$0xff]  }
  0x7a   : > { %1126 = vmatpush1.bf16.msra.mxu1 %v4337_v4  ;;  %908 = vmatprep.subr.bf16.mxu0 %v4338_v5  ;;  %v4343_v8 = vld [vmem:[#allocation9 + $0x120] ss:$24 sps:$4 sm:$0xff]   ;;  %v4346_v10 = vld [vmem:[#allocation9 + $0xf4] ss:$24 sps:$4 sm:$0xff]   ;;  %v4349_v12 = vld [vmem:[#allocation9 + $0xf0] ss:$24 sps:$4 sm:$0xff]  }
  0x7b   : > { %1127 = vmatprep.subr.bf16.mxu1 %v4340_v6  ;;  %v4350_v13 = vld [vmem:[#allocation9 + $0xcc] ss:$24 sps:$4 sm:$0xff]   ;;  %v4354_v15 = vld [vmem:[#allocation9 + $0xc8] ss:$24 sps:$4 sm:$0xff]   ;;  %v4356_v17 = vld [vmem:[#allocation9 + $0x9c] ss:$24 sps:$4 sm:$0xff]  }
  0x7c   : > { %v4352_v14 = vld [vmem:[#allocation9 + $0xc4] ss:$24 sps:$4 sm:$0xff]   ;;  %v4355_v16 = vld [vmem:[#allocation9 + $0xc0] ss:$24 sps:$4 sm:$0xff]   ;;  %v4358_v18 = vld [vmem:[#allocation9 + $0x94] ss:$24 sps:$4 sm:$0xff]  }
  0x7d   : > { %909 = vmatpush1.bf16.msra.mxu0 %v4342_v7  ;;  %v4360_v19 = vld [vmem:[#allocation9 + $0x98] ss:$24 sps:$4 sm:$0xff]   ;;  %v4362_v21 = vld [vmem:[#allocation9 + $0x6c] ss:$24 sps:$4 sm:$0xff]   ;;  %v4366_v23 = vld [vmem:[#allocation9 + $0x68] ss:$24 sps:$4 sm:$0xff]  }
  0x7e   : > { %1128 = vmatpush1.bf16.msra.mxu1 %v4343_v8  ;;  %910 = vmatprep.subr.bf16.mxu0 %v4344_v9  ;;  %v4361_v20 = vld [vmem:[#allocation9 + $0x90] ss:$24 sps:$4 sm:$0xff]   ;;  %v4364_v22 = vld [vmem:[#allocation9 + $0x64] ss:$24 sps:$4 sm:$0xff]   ;;  %v4367_v24 = vld [vmem:[#allocation9 + $0x60] ss:$24 sps:$4 sm:$0xff]  }
  0x7f   : > { %1129 = vmatprep.subr.bf16.mxu1 %v4346_v10  ;;  %v4368_v25 = vld [vmem:[#allocation9 + $0x3c] ss:$24 sps:$4 sm:$0xff]   ;;  %v4372_v27 = vld [vmem:[#allocation9 + $0x38] ss:$24 sps:$4 sm:$0xff]   ;;  %v4374_v29 = vld [vmem:[#allocation9 + $0xc] ss:$24 sps:$4 sm:$0xff]  }
  0x80   : > { %v4370_v26 = vld [vmem:[#allocation9 + $0x34] ss:$24 sps:$4 sm:$0xff]   ;;  %v4373_v28 = vld [vmem:[#allocation9 + $0x30] ss:$24 sps:$4 sm:$0xff]   ;;  %v4376_v30 = vld [vmem:[#allocation9 + $0x4] ss:$24 sps:$4 sm:$0xff]  }
  0x81   : > { %911 = vmatpush1.bf16.msra.mxu0 %v4348_v11  ;;  %v4378_v31 = vld [vmem:[#allocation9 + $0x8] ss:$24 sps:$4 sm:$0xff]   ;;  %v4380_v33 = vld [vmem:[#allocation9 + $0x2dc] ss:$24 sps:$4 sm:$0xff]   ;;  %v4384_v35 = vld [vmem:[#allocation9 + $0x2d8] ss:$24 sps:$4 sm:$0xff]  }
  0x82   : > { %1130 = vmatpush1.bf16.msra.mxu1 %v4349_v12  ;;  %912 = vmatprep.subr.bf16.mxu0 %v4350_v13  ;;  %v4379_v32 = vld [vmem:[#allocation9] ss:$24 sps:$4 sm:$0xff]   ;;  %v4382_v34 = vld [vmem:[#allocation9 + $0x2d4] ss:$24 sps:$4 sm:$0xff]   ;;  %v4385_v36 = vld [vmem:[#allocation9 + $0x2d0] ss:$24 sps:$4 sm:$0xff]  }
  0x83   : > { %1131 = vmatprep.subr.bf16.mxu1 %v4352_v14  ;;  %v4386_v37 = vld [vmem:[#allocation9 + $0x2ac] ss:$24 sps:$4 sm:$0xff]   ;;  %v4390_v40 = vld [vmem:[#allocation9 + $0x2a8] ss:$24 sps:$4 sm:$0xff]   ;;  %v4392_v42 = vld [vmem:[#allocation9 + $0x27c] ss:$24 sps:$4 sm:$0xff]  }
  0x84   : > { %v4388_v39 = vld [vmem:[#allocation9 + $0x2a4] ss:$24 sps:$4 sm:$0xff]   ;;  %v4391_v41 = vld [vmem:[#allocation9 + $0x2a0] ss:$24 sps:$4 sm:$0xff]   ;;  %v5329_v43 = vshrl.u32 %v326_v38, 7  ;;  %vm5335_vm0 = vcmp.lt.s32.totalorder %v326_v38, 256 }
  0x85   : > { %913 = vmatpush1.bf16.msra.mxu0 %v4354_v15  ;;  %v4394_v44 = vld [vmem:[#allocation9 + $0x274] ss:$24 sps:$4 sm:$0xff]   ;;  %v4396_v45 = vld [vmem:[#allocation9 + $0x278] ss:$24 sps:$4 sm:$0xff]   ;;  %v4400_v49 = vld [vmem:[#allocation9 + $0x244] ss:$24 sps:$4 sm:$0xff]  }
  0x86   : > { %1132 = vmatpush1.bf16.msra.mxu1 %v4355_v16  ;;  %914 = vmatprep.subr.bf16.mxu0 %v4356_v17  ;;  %v4397_v46 = vld [vmem:[#allocation9 + $0x270] ss:$24 sps:$4 sm:$0xff]   ;;  %v4398_v47 = vld [vmem:[#allocation9 + $0x24c] ss:$24 sps:$4 sm:$0xff]   ;;  %v5332_v48 = vsub.s32 1, %v5329_v43  ;;  %v5349_v7 = vsub.s32 0, %v5329_v43 }
  0x87   : > { %1133 = vmatprep.subr.bf16.mxu1 %v4358_v18  ;;  %v4402_v50 = vld [vmem:[#allocation9 + $0x248] ss:$24 sps:$4 sm:$0xff]   ;;  %v4404_v53 = vld [vmem:[#allocation9 + $0x21c] ss:$24 sps:$4 sm:$0xff]   ;;  %v4408_v58 = vld [vmem:[#allocation9 + $0x218] ss:$24 sps:$4 sm:$0xff]  }
  0x88   : > { %v4403_v51 = vld [vmem:[#allocation9 + $0x240] ss:$24 sps:$4 sm:$0xff]   ;;  %v4406_v54 = vld [vmem:[#allocation9 + $0x214] ss:$24 sps:$4 sm:$0xff]   ;;  %v4409_v59 = vld [vmem:[#allocation9 + $0x210] ss:$24 sps:$4 sm:$0xff]  }
  0x89   : > { %915 = vmatpush1.bf16.msra.mxu0 %v4360_v19  ;;  %v322_v55 = vld [vmem:[#allocation2] ss:$2 sm:$0x3]  ;;  %v5345_v57 = vld [vmem:[%s5483_s2 + $0x4] ss:$8 sps:$4 sm:$0xff]   ;;  %vm1246_vm2 = vcmask 122880  }
  0x8a   : > { %1134 = vmatpush1.bf16.msra.mxu1 %v4361_v20  ;;  %916 = vmatprep.subr.bf16.mxu0 %v4362_v21  ;;  %v333_v56 = vrot.slane %v322_v55, %v5332_v48  ;;  %1704 = vst.msk [vmem:[#allocation4 + $0x2] sm:$0x3] %vm5335_vm0, %v322_v55  ;;  %v4410_v61 = vld [vmem:[#allocation9 + $0x1ec] ss:$24 sps:$4 sm:$0xff]   ;;  %v4414_v63 = vld [vmem:[#allocation9 + $0x1e8] ss:$24 sps:$4 sm:$0xff]   ;;  %v329_v10 = vrot.slane %v322_v55, %v5349_v7 }
  0x8b   : > { %1135 = vmatprep.subr.bf16.mxu1 %v4364_v22  ;;  %1157 = vmatprep.mubr.bf16.mxu1 %v5345_v57  ;;  %v4412_v62 = vld [vmem:[#allocation9 + $0x1e4] ss:$24 sps:$4 sm:$0xff]   ;;  %v4415_v0 = vld [vmem:[#allocation9 + $0x1e0] ss:$24 sps:$4 sm:$0xff]   ;;  %v4418_v2 = vld [vmem:[#allocation9 + $0x1b4] ss:$24 sps:$4 sm:$0xff]  }
  0x8c   : > { %v337_v60 = vpack.c.bf16 %v333_v56, %v333_v56  ;;  %v4416_v1 = vld [vmem:[#allocation9 + $0x1bc] ss:$24 sps:$4 sm:$0xff]   ;;  %v4420_v3 = vld [vmem:[#allocation9 + $0x1b8] ss:$24 sps:$4 sm:$0xff]   ;;  %v4422_v5 = vld [vmem:[#allocation9 + $0x18c] ss:$24 sps:$4 sm:$0xff]   ;;  %v336_v12 = vpack.c.bf16 %v329_v10, %v329_v10 }
  0x8d   : > { %917 = vmatpush1.bf16.msra.mxu0 %v4366_v23  ;;  %v4421_v4 = vld [vmem:[#allocation9 + $0x1b0] ss:$24 sps:$4 sm:$0xff]   ;;  %v4424_v6 = vld [vmem:[#allocation9 + $0x184] ss:$24 sps:$4 sm:$0xff]   ;;  %v4427_v9 = vld [vmem:[#allocation9 + $0x180] ss:$24 sps:$4 sm:$0xff]  }
  0x8e   : > { %1136 = vmatpush1.bf16.msra.mxu1 %v4367_v24  ;;  %918 = vmatprep.subr.bf16.mxu0 %v4368_v25  ;;  %v4426_v8 = vld [vmem:[#allocation9 + $0x188] ss:$24 sps:$4 sm:$0xff]   ;;  %v4428_v11 = vld [vmem:[%s5483_s2] ss:$8 sps:$4 sm:$0xff]   ;;  %v743_v13 = vld [vmem:[#allocation12 + $0x6] sm:$0x3] }
  0x8f   : > { %1137 = vmatprep.subr.bf16.mxu1 %v4370_v26  ;;  %938 = vmatprep.mubr.bf16.mxu0 %v337_v60  ;;  %v1195_v14 = vrot.slane %v743_v13, %v5332_v48  ;;  %v740_v19 = vld [vmem:[#allocation12] sm:$0x3]  ;;  %vm3733_vm3 = vcmp.lt.s32.totalorder %v326_v38, 16  ;;  %vm1259_vm4 = vcmask 130048   ;;  %vm1306_vm5 = vcmp.lt.s32.totalorder %v326_v38, 128 }
  0x90   : > { %v1176_v23 = vrot.slane %v740_v19, %v5332_v48  ;;  %v1172_v25 = vrot.slane %v740_v19, %v5349_v7  ;;  %v4448_v19 = vld [vmem:[#allocation11 + $0xa4] ss:$40 sps:$4 sm:$0xff]   ;;  %vm3691_vm6 = vcmask 1040384  }
  0x91   : > { %919 = vmatpush1.bf16.msra.mxu0 %v4372_v27  ;;  %v1199_v15 = vpack.c.bf16 %v1195_v14, %v1195_v14  ;;  %v4437_v14 = vld [vmem:[#allocation11 + $0x190] ss:$40 sps:$4 sm:$0xff]  }
  0x92   : > { %1138 = vmatpush1.bf16.msra.mxu1 %v4373_v28  ;;  %920 = vmatprep.subr.bf16.mxu0 %v4374_v29 }
  0x93   : > { %1139 = vmatprep.subr.bf16.mxu1 %v4376_v30 }
  0x95   : > { %921 = vmatpush1.bf16.msra.mxu0 %v4378_v31 }
  0x96   : > { %1140 = vmatpush1.bf16.msra.mxu1 %v4379_v32  ;;  %922 = vmatprep.subr.bf16.mxu0 %v4380_v33 }
  0x97   : > { %1141 = vmatprep.subr.bf16.mxu1 %v4382_v34 }
  0x99   : > { %923 = vmatpush2.bf16.msra.mxu0 %v4384_v35 }
  0x9a   : > { %1142 = vmatpush2.bf16.msra.mxu1 %v4385_v36  ;;  %924 = vmatprep.subr.bf16.mxu0 %v4386_v37 }
  0x9b   : > { %1143 = vmatprep.subr.bf16.mxu1 %v4388_v39 }
  0x9d   : > { %925 = vmatpush2.bf16.msra.mxu0 %v4390_v40 }
  0x9e   : > { %1144 = vmatpush2.bf16.msra.mxu1 %v4391_v41  ;;  %926 = vmatprep.subr.bf16.mxu0 %v4392_v42 }
  0x9f   : > { %1145 = vmatprep.subr.bf16.mxu1 %v4394_v44 }
  0xa1   : > { %927 = vmatpush2.bf16.msra.mxu0 %v4396_v45  ;;  %v1191_v45 = vrot.slane %v743_v13, %v5349_v7  ;;  %v4439_v13 = vld [vmem:[#allocation11 + $0x194] ss:$40 sps:$4 sm:$0xff]  }
  0xa2   : > { %1146 = vmatpush2.bf16.msra.mxu1 %v4397_v46  ;;  %928 = vmatprep.subr.bf16.mxu0 %v4398_v47  ;;  %v1243_v47 = vand.u32 127, %v326_v38 }
  0xa3   : > { %1147 = vmatprep.subr.bf16.mxu1 %v4400_v49  ;;  %v1198_v46 = vpack.c.bf16 %v1191_v45, %v1191_v45  ;;  %v4493_v45 = vld [vmem:[#allocation11 + $0x554] ss:$40 sps:$4 sm:$0xff]  }
  0xa4   : > { %vm1244_vm1 = vcmp.lt.s32.totalorder %v1243_v47, 15  ;;  %v4496_v47 = vld [vmem:[#allocation11 + $0x2d4] ss:$40 sps:$4 sm:$0xff]  }
  0xa5   : > { %929 = vmatpush2.bf16.msra.mxu0 %v4402_v50 }
  0xa6   : > { %1148 = vmatpush2.bf16.msra.mxu1 %v4403_v51  ;;  %930 = vmatprep.subr.bf16.mxu0 %v4404_v53 }
  0xa7   : > { %1149 = vmatprep.subr.bf16.mxu1 %v4406_v54 }
  0xa9   : > { %931 = vmatpush2.bf16.msra.mxu0 %v4408_v58 }
  0xaa   : > { %1150 = vmatpush2.bf16.msra.mxu1 %v4409_v59  ;;  %932 = vmatprep.subr.bf16.mxu0 %v4410_v61  ;;  %v5146_v61 = vmov 0  }
  0xab   : > { %1151 = vmatprep.subr.bf16.mxu1 %v4412_v62  ;;  %v4433_v62 = vld [vmem:[#allocation11 + $0x234] ss:$40 sps:$4 sm:$0xff]  }
  0xad   : > { %933 = vmatpush2.bf16.msra.mxu0 %v4414_v63  ;;  %v4455_v63 = vld [vmem:[#allocation11 + $0x730] ss:$40 sps:$4 sm:$0xff]  }
  0xae   : > { %1152 = vmatpush2.bf16.msra.mxu1 %v4415_v0  ;;  %934 = vmatprep.subr.bf16.mxu0 %v4416_v1  ;;  %v4457_v0 = vld [vmem:[#allocation11 + $0x734] ss:$40 sps:$4 sm:$0xff]   ;;  %v4461_v1 = vld [vmem:[#allocation11 + $0x6e0] ss:$40 sps:$4 sm:$0xff]  }
  0xaf   : > { %1153 = vmatprep.subr.bf16.mxu1 %v4418_v2  ;;  %v4463_v2 = vld [vmem:[#allocation11 + $0x6e4] ss:$40 sps:$4 sm:$0xff]  }
  0xb1   : > { %935 = vmatpush2.bf16.msra.mxu0 %v4420_v3  ;;  %v4467_v3 = vld [vmem:[#allocation11 + $0x690] ss:$40 sps:$4 sm:$0xff]  }
  0xb2   : > { %1154 = vmatpush2.bf16.msra.mxu1 %v4421_v4  ;;  %936 = vmatprep.subr.bf16.mxu0 %v4422_v5  ;;  %v4469_v4 = vld [vmem:[#allocation11 + $0x694] ss:$40 sps:$4 sm:$0xff]  }
  0xb3   : > { %1155 = vmatprep.subr.bf16.mxu1 %v4424_v6 }
  0xb5   : > { %937 = vmatpush2.bf16.msra.mxu0 %v4426_v8 }
  0xb6   : > { %1156 = vmatpush2.bf16.msra.mxu1 %v4427_v9  ;;  %v4431_v9 = vld [vmem:[#allocation11 + $0x230] ss:$40 sps:$4 sm:$0xff]  }
  0xb7   : > { %1642 = vmatprep.subr.bf16.mxu1 %v4457_v0 }
  0xb8   : > { %939 = vmatmul.mubr.bf16.vlgmr.msra.gmra.mxu0 %v336_v12  ;;  %v4434_v12 = vld [vmem:[#allocation11 + $0x1e0] ss:$40 sps:$4 sm:$0xff]  }
  0xb9   : > { %1158 = vmatmul.mubr.bf16.vlgmr.msra.gmra.mxu1 %v4428_v11  ;;  %1234 = vmatprep.mubr.bf16.mxu0 %v1199_v15  ;;  %v4442_v15 = vld [vmem:[#allocation11 + $0x144] ss:$40 sps:$4 sm:$0xff]  }
  0xba   : > { %1674 = vmatprep.mubr.bf16.mxu1 %v5146_v61  ;;  %1643 = vmatpush1.bf16.msra.mxu1 %v4455_v63 }
  0xbb   : > { %1644 = vmatprep.subr.bf16.mxu1 %v4463_v2 }
  0xbe   : > { %1645 = vmatpush1.bf16.msra.mxu1 %v4461_v1 }
  0xbf   : > { %1646 = vmatprep.subr.bf16.mxu1 %v4469_v4  ;;  %v5375_v4 = vsub.s32 2, %v5329_v43 }
  0xc2   : > { %1647 = vmatpush1.bf16.msra.mxu1 %v4467_v3 }
 0x178   : > { %v940_v16 = vpop.f32.mrf.mxu0 }
 0x179   : > { %v1159_v17 = vpop.f32.mrf.mxu1  ;;  %v950_v18 = vrot.slane %v940_v16, %v5349_v7  ;;  %v4440_v16 = vld [vmem:[#allocation11 + $0x140] ss:$40 sps:$4 sm:$0xff]  }
 0x17a   : > { %v942_v20 = vpop.f32.mrf.mxu0 }
 0x17b   : > { %v1161_v21 = vpop.f32.mrf.mxu1  ;;  %v954_v22 = vrot.slane %v942_v20, %v5349_v7  ;;  %v1160_v24 = vadd.f32 %v1159_v17, %v950_v18  ;;  %v4445_v17 = vld [vmem:[#allocation11 + $0xf4] ss:$40 sps:$4 sm:$0xff]   ;;  %v4446_v20 = vld [vmem:[#allocation11 + $0xa0] ss:$40 sps:$4 sm:$0xff]  }
 0x17c   : > { %v944_v26 = vpop.f32.mrf.mxu0 }
 0x17d   : > { %v1163_v27 = vpop.f32.mrf.mxu1  ;;  %v1162_v28 = vadd.f32 %v1161_v21, %v954_v22  ;;  %v1179_v35 = vadd.f32 %v1172_v25, %v1160_v24  ;;  %v4451_v21 = vld [vmem:[#allocation11 + $0x54] ss:$40 sps:$4 sm:$0xff]   ;;  %v4452_v24 = vld [vmem:[#allocation11] ss:$40 sps:$4 sm:$0xff]   ;;  %v4458_v26 = vld [vmem:[#allocation11 + $0x4b0] ss:$40 sps:$4 sm:$0xff]  }
 0x17e   : > { %v1164_v29 = vadd.f32 %v1163_v27, %v950_v18  ;;  %v945_v30 = vpop.f32.mrf.mxu0  ;;  %v4443_v18 = vld [vmem:[#allocation11 + $0xf0] ss:$40 sps:$4 sm:$0xff]   ;;  %v4466_v27 = vld [vmem:[#allocation11 + $0x464] ss:$40 sps:$4 sm:$0xff]  }
 0x17f   : > { %v1165_v31 = vpop.f32.mrf.mxu1  ;;  %v1180_v32 = vadd.f32 %v1176_v23, %v1162_v28  ;;  %v1183_v41 = vmax.f32 %v1179_v35, 0.0  ;;  %v4464_v28 = vld [vmem:[#allocation11 + $0x460] ss:$40 sps:$4 sm:$0xff]   ;;  %v4470_v30 = vld [vmem:[#allocation11 + $0x410] ss:$40 sps:$4 sm:$0xff]  }
 0x180   : > { %v1181_v33 = vadd.f32 %v1172_v25, %v1164_v29  ;;  %v1166_v34 = vadd.f32 %v1165_v31, %v954_v22  ;;  %v4449_v22 = vld [vmem:[#allocation11 + $0x50] ss:$40 sps:$4 sm:$0xff]   ;;  %v4460_v25 = vld [vmem:[#allocation11 + $0x4b4] ss:$40 sps:$4 sm:$0xff]   ;;  %v4475_v31 = vld [vmem:[#allocation11 + $0x644] ss:$40 sps:$4 sm:$0xff]  }
 0x181   : > { %v1184_v39 = vmax.f32 %v1180_v32, 0.0  ;;  %v4472_v29 = vld [vmem:[#allocation11 + $0x414] ss:$40 sps:$4 sm:$0xff]   ;;  %v4473_v32 = vld [vmem:[#allocation11 + $0x640] ss:$40 sps:$4 sm:$0xff]   ;;  %1648 = vmatprep.subr.bf16.mxu1 %v4475_v31 }
 0x182   : > { %v1182_v36 = vadd.f32 %v1176_v23, %v1166_v34  ;;  %v1185_v37 = vmax.f32 %v1181_v33, 0.0  ;;  %v4454_v23 = vld [vmem:[#allocation11 + $0x4] ss:$40 sps:$4 sm:$0xff]   ;;  %v4476_v34 = vld [vmem:[#allocation11 + $0x3c0] ss:$40 sps:$4 sm:$0xff]   ;;  %1649 = vmatpush1.bf16.msra.mxu1 %v4473_v32 }
 0x183   : > { %v4478_v33 = vld [vmem:[#allocation11 + $0x3c4] ss:$40 sps:$4 sm:$0xff]   ;;  %v4481_v35 = vld [vmem:[#allocation11 + $0x5f4] ss:$40 sps:$4 sm:$0xff]  }
 0x184   : > { %v1186_v40 = vmax.f32 %v1182_v36, 0.0  ;;  %v1200_v44 = vpack.c.bf16 %v1185_v37, %v1183_v41  ;;  %v4479_v36 = vld [vmem:[#allocation11 + $0x5f0] ss:$40 sps:$4 sm:$0xff]   ;;  %v4484_v37 = vld [vmem:[#allocation11 + $0x374] ss:$40 sps:$4 sm:$0xff]   ;;  %1650 = vmatprep.subr.bf16.mxu1 %v4481_v35 }
 0x185   : > { %v4485_v41 = vld [vmem:[#allocation11 + $0x5a0] ss:$40 sps:$4 sm:$0xff]   ;;  %v4535_v31 = vld [vmem:[#allocation11 + $0xac] ss:$40 sps:$4 sm:$0xff]   ;;  %v4541_v35 = vld [vmem:[#allocation11 + $0x5c] ss:$40 sps:$4 sm:$0xff]  }
 0x186   : > { %v1201_v42 = vpack.c.bf16 %v1186_v40, %v1184_v39  ;;  %v4482_v39 = vld [vmem:[#allocation11 + $0x370] ss:$40 sps:$4 sm:$0xff]   ;;  %1651 = vmatpush1.bf16.msra.mxu1 %v4479_v36  ;;  %v4487_v40 = vld [vmem:[#allocation11 + $0x5a4] ss:$40 sps:$4 sm:$0xff]  }
 0x187   : > { %1652 = vmatprep.subr.bf16.mxu1 %v4487_v40  ;;  %v4538_v32 = vld [vmem:[#allocation11 + $0x5ac] ss:$40 sps:$4 sm:$0xff]   ;;  %v4544_v36 = vld [vmem:[#allocation11 + $0x55c] ss:$40 sps:$4 sm:$0xff]  }
 0x188   : > { %1216 = vmatprep.subr.bf16.mxu0 %v1201_v42  ;;  %v4490_v42 = vld [vmem:[#allocation11 + $0x324] ss:$40 sps:$4 sm:$0xff]  }
 0x189   : > { %1217 = vmatpush1.bf16.xpose.msra.mxu0 %v1200_v44  ;;  %v4488_v44 = vld [vmem:[#allocation11 + $0x320] ss:$40 sps:$4 sm:$0xff]   ;;  %v4547_v40 = vld [vmem:[#allocation11 + $0xc] ss:$40 sps:$4 sm:$0xff]  }
 0x18a   : > { %1277 = vmatprep.subr.bf16.mxu0 %v5345_v57  ;;  %1653 = vmatpush1.bf16.msra.mxu1 %v4485_v41  ;;  %v4550_v41 = vld [vmem:[#allocation11 + $0x50c] ss:$40 sps:$4 sm:$0xff]  }
 0x18b   : > { %1654 = vmatprep.subr.bf16.mxu1 %v4493_v45  ;;  %v4553_v45 = vld [vmem:[#allocation11 + $0x4bc] ss:$40 sps:$4 sm:$0xff]  }
 0x190   : > { %1235 = vmatmul.mubr.bf16.vlgmr.msra.gmra.mxu0 %v1198_v46  ;;  %v4491_v46 = vld [vmem:[#allocation11 + $0x550] ss:$40 sps:$4 sm:$0xff]  }
 0x191   : > { %1278 = vmatpush1.bf16.msra.mxu0 %v4428_v11  ;;  %1295 = vmatprep.mubr.bf16.mxu0 %v5146_v61  ;;  %v4436_v11 = vld [vmem:[#allocation11 + $0x1e4] ss:$40 sps:$4 sm:$0xff]  }
 0x192   : > { %1601 = vmatprep.subr.bf16.mxu0 %v4433_v62  ;;  %1655 = vmatpush1.bf16.msra.mxu1 %v4491_v46  ;;  %v4556_v46 = vld [vmem:[#allocation11 + $0x9bc] ss:$40 sps:$4 sm:$0xff]  }
 0x250   : > { %v1236_v49 = vpop.f32.mrf.mxu0 }
 0x251   : > { %v1245_v50 = vsel %vm1244_vm1, %v1236_v49, -inf  ;;  %v745_v49 = vld [vmem:[%s5302_s26] sm:$0x1] }
 0x252   : > { %v1238_v51 = vpop.f32.mrf.mxu0  ;;  %v1247_v53 = vsel %vm1246_vm2, %v1245_v50, -inf  ;;  %1308 = vst.msk [vmem:[#allocation3] sm:$0x1] %vm1306_vm5, %v745_v49  ;;  %v4554_v49 = vld [vmem:[#allocation11 + $0x9b8] ss:$40 sps:$4 sm:$0xff]  }
 0x253   : > { %1248 = vmax.xlane.f32.xlu0 %v1247_v53  ;;  %v4499_v51 = vld [vmem:[#allocation11 + $0x504] ss:$40 sps:$4 sm:$0xff]  }
 0x254   : > { %v1239_v54 = vpop.f32.mrf.mxu0  ;;  %v4502_v53 = vld [vmem:[#allocation11 + $0x284] ss:$40 sps:$4 sm:$0xff]   ;;  %1656 = vmatprep.subr.bf16.mxu1 %v4499_v51 }
 0x255   : > { %v4497_v54 = vld [vmem:[#allocation11 + $0x500] ss:$40 sps:$4 sm:$0xff]   ;;  %v4562_v51 = vld [vmem:[#allocation11 + $0x96c] ss:$40 sps:$4 sm:$0xff]  }
 0x256   : > { %v1240_v55 = vpop.f32.mrf.mxu0  ;;  %1657 = vmatpush1.bf16.msra.mxu1 %v4497_v54  ;;  %v4560_v54 = vld [vmem:[#allocation11 + $0x968] ss:$40 sps:$4 sm:$0xff]  }
 0x257   : > { %v4500_v55 = vld [vmem:[#allocation11 + $0x280] ss:$40 sps:$4 sm:$0xff]  }
 0x2dc   : > { %v1249_v56 = vpop.xlane.xlu0 %1248 }
 0x2dd   : > { %v1250_v58 = vsub.f32 %v1245_v50, %v1249_v56  ;;  %v4494_v50 = vld [vmem:[#allocation11 + $0x2d0] ss:$40 sps:$4 sm:$0xff]   ;;  %v4505_v56 = vld [vmem:[#allocation11 + $0x23c] ss:$40 sps:$4 sm:$0xff]  }
 0x2de   : > { %3052 = vmatprep.subr.bf16.mxu1 %v4505_v56  ;;  %v4568_v56 = vld [vmem:[#allocation11 + $0x91c] ss:$40 sps:$4 sm:$0xff]  }
 0x2df   : > { %v1251_v59 = vmul.f32 1.442695, %v1250_v58  ;;  %v4508_v58 = vld [vmem:[#allocation11 + $0x73c] ss:$40 sps:$4 sm:$0xff]  }
 0x2e1   : > { %4935 = vpow2.f32 %v1251_v59  ;;  %v5147_v59 = vmov 1966171168  }
 0x2ee   : > { %v4936_v60 = vpop.eup %4935 }
 0x2ef   : > { %v1253_v57 = vsel %vm1246_vm2, %v4936_v60, 0.0 }
 0x2f0   : > { %1254 = vadd.xlane.f32.xlu0 %v1253_v57 }
 0x379   : > { %v1255_v5 = vpop.xlane.xlu0 %1254 }
 0x37a   : > { %4937 = vrcp.f32 %v1255_v5 }
 0x387   : > { %v4938_v6 = vpop.eup %4937 }
 0x388   : > { %v1257_v8 = vmul.f32 %v4938_v6, %v4936_v60  ;;  %v1313_v60 = vunpack.c.l.s4 %v5147_v59  ;;  %v4566_v59 = vld [vmem:[#allocation11 + $0x918] ss:$40 sps:$4 sm:$0xff]  }
 0x38a   : > { %3735 = vst.msk [vmem:[%s5321_s10 + $0x6] sm:$0x1] %vm3733_vm3, %v1257_v8  ;;  %v1258_v10 = vpack.c.bf16 %v1257_v8, %v1257_v8  ;;  %v1314_v57 = vunpack.c.0.s8 %v1313_v60  ;;  %v4571_v60 = vld [vmem:[#allocation11 + $0x3cc] ss:$40 sps:$4 sm:$0xff]  }
 0x38c   : > { %3905 = vmatmul.mubr.msk.bf16.vlgmr.msra.gmra.mxu0 %vm1259_vm4, %v1258_v10  ;;  %v5368_v62 = vsub.s32 %v1314_v57, %v5329_v43  ;;  %v4503_v10 = vld [vmem:[#allocation11 + $0x238] ss:$40 sps:$4 sm:$0xff]   ;;  %v4574_v57 = vld [vmem:[#allocation11 + $0x8cc] ss:$40 sps:$4 sm:$0xff]  }
 0x38d   : > { %1602 = vmatpush1.bf16.msra.mxu0 %v4431_v9 }
 0x38e   : > { %1603 = vmatprep.subr.bf16.mxu0 %v4436_v11 }
 0x391   : > { %1604 = vmatpush1.bf16.msra.mxu0 %v4434_v12 }
 0x392   : > { %1605 = vmatprep.subr.bf16.mxu0 %v4439_v13 }
 0x395   : > { %1606 = vmatpush1.bf16.msra.mxu0 %v4437_v14  ;;  %v4506_v14 = vld [vmem:[#allocation11 + $0x738] ss:$40 sps:$4 sm:$0xff]  }
 0x396   : > { %1607 = vmatprep.subr.bf16.mxu0 %v4442_v15  ;;  %v4511_v15 = vld [vmem:[#allocation11 + $0x1ec] ss:$40 sps:$4 sm:$0xff]  }
 0x399   : > { %1608 = vmatpush1.bf16.msra.mxu0 %v4440_v16  ;;  %v4514_v16 = vld [vmem:[#allocation11 + $0x6ec] ss:$40 sps:$4 sm:$0xff]  }
 0x39a   : > { %1609 = vmatprep.subr.bf16.mxu0 %v4445_v17  ;;  %v4509_v17 = vld [vmem:[#allocation11 + $0x1e8] ss:$40 sps:$4 sm:$0xff]  }
 0x39d   : > { %1610 = vmatpush1.bf16.msra.mxu0 %v4443_v18  ;;  %v4512_v18 = vld [vmem:[#allocation11 + $0x6e8] ss:$40 sps:$4 sm:$0xff]  }
 0x39e   : > { %1611 = vmatprep.subr.bf16.mxu0 %v4448_v19  ;;  %v4517_v19 = vld [vmem:[#allocation11 + $0x19c] ss:$40 sps:$4 sm:$0xff]  }
 0x3a1   : > { %1612 = vmatpush1.bf16.msra.mxu0 %v4446_v20  ;;  %v4520_v20 = vld [vmem:[#allocation11 + $0x69c] ss:$40 sps:$4 sm:$0xff]  }
 0x3a2   : > { %1613 = vmatprep.subr.bf16.mxu0 %v4451_v21  ;;  %v4515_v21 = vld [vmem:[#allocation11 + $0x198] ss:$40 sps:$4 sm:$0xff]  }
 0x3a5   : > { %1614 = vmatpush1.bf16.msra.mxu0 %v4449_v22  ;;  %v4518_v22 = vld [vmem:[#allocation11 + $0x698] ss:$40 sps:$4 sm:$0xff]  }
 0x3a6   : > { %1615 = vmatprep.subr.bf16.mxu0 %v4454_v23  ;;  %v4523_v23 = vld [vmem:[#allocation11 + $0x14c] ss:$40 sps:$4 sm:$0xff]  }
 0x3a9   : > { %1616 = vmatpush1.bf16.msra.mxu0 %v4452_v24  ;;  %v4526_v24 = vld [vmem:[#allocation11 + $0x64c] ss:$40 sps:$4 sm:$0xff]  }
 0x3aa   : > { %1617 = vmatprep.subr.bf16.mxu0 %v4460_v25  ;;  %v4521_v25 = vld [vmem:[#allocation11 + $0x148] ss:$40 sps:$4 sm:$0xff]  }
 0x3ad   : > { %1618 = vmatpush2.bf16.msra.mxu0 %v4458_v26  ;;  %v4524_v26 = vld [vmem:[#allocation11 + $0x648] ss:$40 sps:$4 sm:$0xff]  }
 0x3ae   : > { %1619 = vmatprep.subr.bf16.mxu0 %v4466_v27  ;;  %v4529_v27 = vld [vmem:[#allocation11 + $0xfc] ss:$40 sps:$4 sm:$0xff]  }
 0x3b1   : > { %1620 = vmatpush2.bf16.msra.mxu0 %v4464_v28  ;;  %v4532_v28 = vld [vmem:[#allocation11 + $0x5fc] ss:$40 sps:$4 sm:$0xff]  }
 0x3b2   : > { %1621 = vmatprep.subr.bf16.mxu0 %v4472_v29  ;;  %v4527_v29 = vld [vmem:[#allocation11 + $0xf8] ss:$40 sps:$4 sm:$0xff]  }
 0x3b5   : > { %1622 = vmatpush2.bf16.msra.mxu0 %v4470_v30  ;;  %v4530_v30 = vld [vmem:[#allocation11 + $0x5f8] ss:$40 sps:$4 sm:$0xff]  }
 0x3b6   : > { %1623 = vmatprep.subr.bf16.mxu0 %v4478_v33  ;;  %v4533_v33 = vld [vmem:[#allocation11 + $0xa8] ss:$40 sps:$4 sm:$0xff]  }
 0x3b9   : > { %1624 = vmatpush2.bf16.msra.mxu0 %v4476_v34  ;;  %v4536_v34 = vld [vmem:[#allocation11 + $0x5a8] ss:$40 sps:$4 sm:$0xff]  }
 0x3ba   : > { %1625 = vmatprep.subr.bf16.mxu0 %v4484_v37  ;;  %v4539_v37 = vld [vmem:[#allocation11 + $0x58] ss:$40 sps:$4 sm:$0xff]  }
 0x3bd   : > { %1626 = vmatpush2.bf16.msra.mxu0 %v4482_v39  ;;  %v4542_v39 = vld [vmem:[#allocation11 + $0x558] ss:$40 sps:$4 sm:$0xff]  }
 0x3be   : > { %1627 = vmatprep.subr.bf16.mxu0 %v4490_v42  ;;  %v4545_v42 = vld [vmem:[#allocation11 + $0x8] ss:$40 sps:$4 sm:$0xff]  }
 0x3c1   : > { %1628 = vmatpush2.bf16.msra.mxu0 %v4488_v44  ;;  %v4548_v44 = vld [vmem:[#allocation11 + $0x508] ss:$40 sps:$4 sm:$0xff]  }
 0x3c2   : > { %1629 = vmatprep.subr.bf16.mxu0 %v4496_v47  ;;  %v4551_v47 = vld [vmem:[#allocation11 + $0x4b8] ss:$40 sps:$4 sm:$0xff]  }
 0x3c5   : > { %1630 = vmatpush2.bf16.msra.mxu0 %v4494_v50  ;;  %v4559_v50 = vld [vmem:[#allocation11 + $0x46c] ss:$40 sps:$4 sm:$0xff]  }
 0x3c6   : > { %1631 = vmatprep.subr.bf16.mxu0 %v4502_v53  ;;  %v4557_v53 = vld [vmem:[#allocation11 + $0x468] ss:$40 sps:$4 sm:$0xff]  }
 0x3c9   : > { %1632 = vmatpush2.bf16.msra.mxu0 %v4500_v55  ;;  %v4565_v55 = vld [vmem:[#allocation11 + $0x41c] ss:$40 sps:$4 sm:$0xff]  }
 0x3ca   : > { %3093 = vmatprep.subr.bf16.mxu0 %v4508_v58  ;;  %v4563_v58 = vld [vmem:[#allocation11 + $0x418] ss:$40 sps:$4 sm:$0xff]  }
 0x44c   : > { %v1297_v61 = vpop.f32.mrf.mxu0 }
 0x44e   : > { %v1299_v38 = vpop.f32.mrf.mxu0 }
 0x44f   : > { %v1311_v63 = vcombine.low %v1297_v61, %v1299_v38  ;;  %v4569_v61 = vld [vmem:[#allocation11 + $0x3c8] ss:$40 sps:$4 sm:$0xff]  }
 0x450   : > { %v1301_v0 = vpop.f32.mrf.mxu0  ;;  %v4572_v38 = vld [vmem:[#allocation11 + $0x8c8] ss:$40 sps:$4 sm:$0xff]  }
 0x451   : > { %v1318_v1 = vrot.slane %v1311_v63, %v5368_v62  ;;  %v4577_v63 = vld [vmem:[#allocation11 + $0x37c] ss:$40 sps:$4 sm:$0xff]  }
 0x452   : > { %v1302_v2 = vpop.f32.mrf.mxu0  ;;  %v4580_v0 = vld [vmem:[#allocation11 + $0x87c] ss:$40 sps:$4 sm:$0xff]  }
 0x453   : > { %v1325_v3 = vrot.slane %v1318_v1, %v5368_v62  ;;  %v4575_v1 = vld [vmem:[#allocation11 + $0x378] ss:$40 sps:$4 sm:$0xff]  }
 0x454   : > { %v4578_v2 = vld [vmem:[#allocation11 + $0x878] ss:$40 sps:$4 sm:$0xff]  }
 0x455   : > { %1329 = vst.msk [vmem:[#allocation3 + $0x1] sm:$0x3] %vm5335_vm0, %v1325_v3  ;;  %v4583_v3 = vld [vmem:[#allocation11 + $0x32c] ss:$40 sps:$4 sm:$0xff]  }
 0x45c   : > { %v1330_v5 = vld [vmem:[#allocation3] sm:$0x7] }
 0x45d   : > { %v1339_v6 = vrot.slane %v1330_v5, %v5332_v48  ;;  %v1343_v8 = vrot.slane %v1330_v5, %v5375_v4  ;;  %v1335_v9 = vrot.slane %v1330_v5, %v5349_v7  ;;  %v4586_v5 = vld [vmem:[#allocation11 + $0x82c] ss:$40 sps:$4 sm:$0xff]  }
 0x45f   : > { %v1348_v11 = vpack.c.bf16 %v1339_v6, %v1339_v6  ;;  %v1349_v12 = vpack.c.bf16 %v1343_v8, %v1343_v8  ;;  %v1347_v13 = vpack.c.bf16 %v1335_v9, %v1335_v9  ;;  %v4581_v6 = vld [vmem:[#allocation11 + $0x328] ss:$40 sps:$4 sm:$0xff]   ;;  %v4589_v9 = vld [vmem:[#allocation11 + $0x2dc] ss:$40 sps:$4 sm:$0xff]  }
 0x460   : > { %v4584_v8 = vld [vmem:[#allocation11 + $0x828] ss:$40 sps:$4 sm:$0xff]  }
 0x461   : > { %1633 = vmatprep.mubr.bf16.mxu0 %v1348_v11  ;;  %1675 = vmatmul.mubr.bf16.vlgmr.msra.gmra.mxu1 %v1349_v12  ;;  %v4590_v11 = vld [vmem:[#allocation11 + $0x7d8] ss:$40 sps:$4 sm:$0xff]   ;;  %v4592_v12 = vld [vmem:[#allocation11 + $0x7dc] ss:$40 sps:$4 sm:$0xff]  }
 0x462   : > { %1634 = vmatmul.mubr.bf16.vlgmr.msra.gmra.mxu0 %v1347_v13  ;;  %3053 = vmatpush1.bf16.msra.mxu1 %v4503_v10  ;;  %v4587_v10 = vld [vmem:[#allocation11 + $0x2d8] ss:$40 sps:$4 sm:$0xff]   ;;  %v4595_v13 = vld [vmem:[#allocation11 + $0x28c] ss:$40 sps:$4 sm:$0xff]  }
 0x463   : > { %3094 = vmatpush1.bf16.msra.mxu0 %v4506_v14  ;;  %3054 = vmatprep.subr.bf16.mxu1 %v4511_v15  ;;  %v4598_v14 = vld [vmem:[#allocation11 + $0x78c] ss:$40 sps:$4 sm:$0xff]   ;;  %v4593_v15 = vld [vmem:[#allocation11 + $0x288] ss:$40 sps:$4 sm:$0xff]  }
 0x464   : > { %3095 = vmatprep.subr.bf16.mxu0 %v4514_v16  ;;  %v4596_v16 = vld [vmem:[#allocation11 + $0x788] ss:$40 sps:$4 sm:$0xff]  }
 0x466   : > { %3055 = vmatpush1.bf16.msra.mxu1 %v4509_v17  ;;  %v4601_v17 = vld [vmem:[#allocation11 + $0x244] ss:$40 sps:$4 sm:$0xff]  }
 0x467   : > { %3096 = vmatpush1.bf16.msra.mxu0 %v4512_v18  ;;  %3056 = vmatprep.subr.bf16.mxu1 %v4517_v19  ;;  %v4604_v18 = vld [vmem:[#allocation11 + $0x744] ss:$40 sps:$4 sm:$0xff]   ;;  %v741_v19 = vld [vmem:[#allocation12 + $0x2] sm:$0x3] }
 0x468   : > { %3097 = vmatprep.subr.bf16.mxu0 %v4520_v20  ;;  %v1594_v20 = vrot.slane %v741_v19, %v5349_v7 }
 0x46a   : > { %3057 = vmatpush1.bf16.msra.mxu1 %v4515_v21 }
 0x46b   : > { %3098 = vmatpush1.bf16.msra.mxu0 %v4518_v22  ;;  %3058 = vmatprep.subr.bf16.mxu1 %v4523_v23  ;;  %v1598_v22 = vrot.slane %v741_v19, %v5332_v48  ;;  %v4641_v19 = vld [vmem:[#allocation11 + $0x10] ss:$40 sps:$4 sm:$0xff]  }
 0x46c   : > { %3099 = vmatprep.subr.bf16.mxu0 %v4526_v24 }
 0x46e   : > { %3059 = vmatpush1.bf16.msra.mxu1 %v4521_v25 }
 0x46f   : > { %3100 = vmatpush1.bf16.msra.mxu0 %v4524_v26  ;;  %3060 = vmatprep.subr.bf16.mxu1 %v4529_v27 }
 0x470   : > { %3101 = vmatprep.subr.bf16.mxu0 %v4532_v28 }
 0x472   : > { %3061 = vmatpush1.bf16.msra.mxu1 %v4527_v29 }
 0x473   : > { %3102 = vmatpush1.bf16.msra.mxu0 %v4530_v30  ;;  %3062 = vmatprep.subr.bf16.mxu1 %v4535_v31 }
 0x474   : > { %3103 = vmatprep.subr.bf16.mxu0 %v4538_v32 }
 0x476   : > { %3063 = vmatpush1.bf16.msra.mxu1 %v4533_v33 }
 0x477   : > { %3104 = vmatpush1.bf16.msra.mxu0 %v4536_v34  ;;  %3064 = vmatprep.subr.bf16.mxu1 %v4541_v35 }
 0x478   : > { %3105 = vmatprep.subr.bf16.mxu0 %v4544_v36 }
 0x47a   : > { %3065 = vmatpush1.bf16.msra.mxu1 %v4539_v37 }
 0x47b   : > { %3106 = vmatpush1.bf16.msra.mxu0 %v4542_v39  ;;  %3066 = vmatprep.subr.bf16.mxu1 %v4547_v40  ;;  %v1721_v40 = vsub.s32 3, %v5329_v43 }
 0x47c   : > { %3107 = vmatprep.subr.bf16.mxu0 %v4550_v41 }
 0x47e   : > { %3067 = vmatpush1.bf16.msra.mxu1 %v4545_v42 }
 0x47f   : > { %3108 = vmatpush1.bf16.msra.mxu0 %v4548_v44  ;;  %3068 = vmatprep.subr.bf16.mxu1 %v4553_v45 }
 0x480   : > { %3109 = vmatprep.subr.bf16.mxu0 %v4556_v46 }
 0x482   : > { %3069 = vmatpush2.bf16.msra.mxu1 %v4551_v47 }
 0x483   : > { %3110 = vmatpush2.bf16.msra.mxu0 %v4554_v49  ;;  %3070 = vmatprep.subr.bf16.mxu1 %v4559_v50  ;;  %v4599_v50 = vld [vmem:[#allocation11 + $0x240] ss:$40 sps:$4 sm:$0xff]  }
 0x484   : > { %3111 = vmatprep.subr.bf16.mxu0 %v4562_v51  ;;  %v4602_v51 = vld [vmem:[#allocation11 + $0x740] ss:$40 sps:$4 sm:$0xff]  }
 0x486   : > { %3071 = vmatpush2.bf16.msra.mxu1 %v4557_v53 }
 0x487   : > { %3112 = vmatpush2.bf16.msra.mxu0 %v4560_v54  ;;  %3072 = vmatprep.subr.bf16.mxu1 %v4565_v55  ;;  %v4607_v55 = vld [vmem:[#allocation11 + $0x1f4] ss:$40 sps:$4 sm:$0xff]  }
 0x488   : > { %3113 = vmatprep.subr.bf16.mxu0 %v4568_v56  ;;  %v4610_v56 = vld [vmem:[#allocation11 + $0x6f4] ss:$40 sps:$4 sm:$0xff]  }
 0x48a   : > { %3073 = vmatpush2.bf16.msra.mxu1 %v4563_v58  ;;  %v4605_v58 = vld [vmem:[#allocation11 + $0x1f0] ss:$40 sps:$4 sm:$0xff]  }
 0x48b   : > { %3114 = vmatpush2.bf16.msra.mxu0 %v4566_v59  ;;  %3074 = vmatprep.subr.bf16.mxu1 %v4571_v60  ;;  %v4608_v59 = vld [vmem:[#allocation11 + $0x6f0] ss:$40 sps:$4 sm:$0xff]   ;;  %v4613_v60 = vld [vmem:[#allocation11 + $0x1a4] ss:$40 sps:$4 sm:$0xff]  }
 0x48c   : > { %3115 = vmatprep.subr.bf16.mxu0 %v4574_v57  ;;  %v4616_v57 = vld [vmem:[#allocation11 + $0x6a4] ss:$40 sps:$4 sm:$0xff]  }
 0x48e   : > { %3075 = vmatpush2.bf16.msra.mxu1 %v4569_v61  ;;  %v4611_v61 = vld [vmem:[#allocation11 + $0x1a0] ss:$40 sps:$4 sm:$0xff]  }
 0x48f   : > { %3116 = vmatpush2.bf16.msra.mxu0 %v4572_v38  ;;  %3076 = vmatprep.subr.bf16.mxu1 %v4577_v63  ;;  %v4614_v38 = vld [vmem:[#allocation11 + $0x6a0] ss:$40 sps:$4 sm:$0xff]   ;;  %v4619_v63 = vld [vmem:[#allocation11 + $0x154] ss:$40 sps:$4 sm:$0xff]  }
 0x490   : > { %3117 = vmatprep.subr.bf16.mxu0 %v4580_v0  ;;  %v4622_v0 = vld [vmem:[#allocation11 + $0x654] ss:$40 sps:$4 sm:$0xff]  }
 0x492   : > { %3077 = vmatpush2.bf16.msra.mxu1 %v4575_v1  ;;  %v4617_v1 = vld [vmem:[#allocation11 + $0x150] ss:$40 sps:$4 sm:$0xff]  }
 0x493   : > { %3118 = vmatpush2.bf16.msra.mxu0 %v4578_v2  ;;  %3078 = vmatprep.subr.bf16.mxu1 %v4583_v3  ;;  %v4620_v2 = vld [vmem:[#allocation11 + $0x650] ss:$40 sps:$4 sm:$0xff]   ;;  %v4625_v3 = vld [vmem:[#allocation11 + $0x104] ss:$40 sps:$4 sm:$0xff]  }
 0x494   : > { %3119 = vmatprep.subr.bf16.mxu0 %v4586_v5  ;;  %v4628_v5 = vld [vmem:[#allocation11 + $0x604] ss:$40 sps:$4 sm:$0xff]  }
 0x496   : > { %3079 = vmatpush2.bf16.msra.mxu1 %v4581_v6  ;;  %v4623_v6 = vld [vmem:[#allocation11 + $0x100] ss:$40 sps:$4 sm:$0xff]  }
 0x497   : > { %3120 = vmatpush2.bf16.msra.mxu0 %v4584_v8  ;;  %3080 = vmatprep.subr.bf16.mxu1 %v4589_v9  ;;  %v4626_v8 = vld [vmem:[#allocation11 + $0x600] ss:$40 sps:$4 sm:$0xff]   ;;  %v4631_v9 = vld [vmem:[#allocation11 + $0xb4] ss:$40 sps:$4 sm:$0xff]  }
 0x498   : > { %3121 = vmatprep.subr.bf16.mxu0 %v4592_v12  ;;  %v4632_v12 = vld [vmem:[#allocation11 + $0x5b0] ss:$40 sps:$4 sm:$0xff]  }
 0x49a   : > { %3081 = vmatpush2.bf16.msra.mxu1 %v4587_v10  ;;  %v4634_v10 = vld [vmem:[#allocation11 + $0x5b4] ss:$40 sps:$4 sm:$0xff]  }
 0x49b   : > { %3122 = vmatpush2.bf16.msra.mxu0 %v4590_v11  ;;  %3082 = vmatprep.subr.bf16.mxu1 %v4595_v13  ;;  %v4629_v11 = vld [vmem:[#allocation11 + $0xb0] ss:$40 sps:$4 sm:$0xff]   ;;  %v4637_v13 = vld [vmem:[#allocation11 + $0x64] ss:$40 sps:$4 sm:$0xff]  }
 0x49c   : > { %3123 = vmatprep.subr.bf16.mxu0 %v4598_v14  ;;  %v4640_v14 = vld [vmem:[#allocation11 + $0x564] ss:$40 sps:$4 sm:$0xff]  }
 0x49e   : > { %3083 = vmatpush2.bf16.msra.mxu1 %v4593_v15  ;;  %v4635_v15 = vld [vmem:[#allocation11 + $0x60] ss:$40 sps:$4 sm:$0xff]  }
 0x49f   : > { %3124 = vmatpush2.bf16.msra.mxu0 %v4596_v16  ;;  %3134 = vmatprep.subr.bf16.mxu1 %v4601_v17  ;;  %v4638_v16 = vld [vmem:[#allocation11 + $0x560] ss:$40 sps:$4 sm:$0xff]   ;;  %v4643_v17 = vld [vmem:[#allocation11 + $0x14] ss:$40 sps:$4 sm:$0xff]  }
 0x4a0   : > { %3175 = vmatprep.subr.bf16.mxu0 %v4604_v18  ;;  %v4646_v18 = vld [vmem:[#allocation11 + $0x514] ss:$40 sps:$4 sm:$0xff]  }
 0x521   : > { %v1676_v21 = vpop.f32.mrf.mxu1 }
 0x522   : > { %v1635_v23 = vpop.f32.mrf.mxu0 }
 0x523   : > { %v1636_v24 = vadd.f32 %v1635_v23, %v1594_v20  ;;  %v1678_v25 = vpop.f32.mrf.mxu1  ;;  %v4644_v20 = vld [vmem:[#allocation11 + $0x510] ss:$40 sps:$4 sm:$0xff]   ;;  %v4647_v23 = vld [vmem:[#allocation11 + $0x4c0] ss:$40 sps:$4 sm:$0xff]  }
 0x524   : > { %v1637_v26 = vpop.f32.mrf.mxu0 }
 0x525   : > { %v1677_v27 = vadd.f32 %v1676_v21, %v1636_v24  ;;  %v1638_v28 = vadd.f32 %v1637_v26, %v1598_v22  ;;  %v1680_v29 = vpop.f32.mrf.mxu1  ;;  %v4649_v21 = vld [vmem:[#allocation11 + $0x4c4] ss:$40 sps:$4 sm:$0xff]   ;;  %v4650_v24 = vld [vmem:[#allocation11 + $0x9c0] ss:$40 sps:$4 sm:$0xff]   ;;  %v4658_v26 = vld [vmem:[#allocation11 + $0x974] ss:$40 sps:$4 sm:$0xff]  }
 0x526   : > { %v1639_v30 = vpop.f32.mrf.mxu0  ;;  %v4652_v22 = vld [vmem:[#allocation11 + $0x9c4] ss:$40 sps:$4 sm:$0xff]  }
 0x527   : > { %v1679_v31 = vadd.f32 %v1678_v25, %v1638_v28  ;;  %v1681_v32 = vpop.f32.mrf.mxu1  ;;  %v1683_v34 = vmax.f32 %v1677_v27, 0.0  ;;  %v4655_v25 = vld [vmem:[#allocation11 + $0x474] ss:$40 sps:$4 sm:$0xff]   ;;  %v4653_v27 = vld [vmem:[#allocation11 + $0x470] ss:$40 sps:$4 sm:$0xff]  }
 0x528   : > { %v1640_v33 = vpop.f32.mrf.mxu0  ;;  %v4656_v28 = vld [vmem:[#allocation11 + $0x970] ss:$40 sps:$4 sm:$0xff]   ;;  %v4661_v29 = vld [vmem:[#allocation11 + $0x424] ss:$40 sps:$4 sm:$0xff]   ;;  %v4662_v32 = vld [vmem:[#allocation11 + $0x920] ss:$40 sps:$4 sm:$0xff]  }
 0x529   : > { %v1684_v35 = vmax.f32 %v1679_v31, 0.0  ;;  %v4664_v30 = vld [vmem:[#allocation11 + $0x924] ss:$40 sps:$4 sm:$0xff]   ;;  %v4659_v31 = vld [vmem:[#allocation11 + $0x420] ss:$40 sps:$4 sm:$0xff]  }
 0x52a   : > { %v4667_v33 = vld [vmem:[#allocation11 + $0x3d4] ss:$40 sps:$4 sm:$0xff]  }
 0x52b   : > { %v1687_v36 = vcombine.low %v1683_v34, %v1684_v35  ;;  %v4670_v34 = vld [vmem:[#allocation11 + $0x8d4] ss:$40 sps:$4 sm:$0xff]   ;;  %v4665_v35 = vld [vmem:[#allocation11 + $0x3d0] ss:$40 sps:$4 sm:$0xff]  }
 0x52d   : > { %v1694_v37 = vrot.slane %v1687_v36, %v5368_v62  ;;  %v4668_v36 = vld [vmem:[#allocation11 + $0x8d0] ss:$40 sps:$4 sm:$0xff]  }
 0x52f   : > { %v1701_v39 = vrot.slane %v1694_v37, %v5368_v62  ;;  %v4673_v37 = vld [vmem:[#allocation11 + $0x384] ss:$40 sps:$4 sm:$0xff]  }
 0x531   : > { %1703 = vst.msk [vmem:[#allocation4] sm:$0x3] %vm5335_vm0, %v1701_v39  ;;  %v4676_v39 = vld [vmem:[#allocation11 + $0x884] ss:$40 sps:$4 sm:$0xff]  }
 0x538   : > { %v1705_v41 = vld [vmem:[#allocation4] sm:$0xf] }
 0x539   : > { %v1714_v42 = vrot.slane %v1705_v41, %v5332_v48  ;;  %v1722_v44 = vrot.slane %v1705_v41, %v1721_v40  ;;  %v1710_v45 = vrot.slane %v1705_v41, %v5349_v7  ;;  %v1718_v46 = vrot.slane %v1705_v41, %v5375_v4  ;;  %v4671_v41 = vld [vmem:[#allocation11 + $0x380] ss:$40 sps:$4 sm:$0xff]  }
 0x53b   : > { %v5392_v47 = vpack.c.bf16 %v1714_v42, %v1714_v42  ;;  %v5394_v49 = vpack.c.bf16 %v1722_v44, %v1722_v44  ;;  %v5396_v53 = vpack.c.bf16 %v1710_v45, %v1710_v45  ;;  %v5398_v54 = vpack.c.bf16 %v1718_v46, %v1718_v46  ;;  %v4674_v42 = vld [vmem:[#allocation11 + $0x880] ss:$40 sps:$4 sm:$0xff]   ;;  %v4679_v44 = vld [vmem:[#allocation11 + $0x334] ss:$40 sps:$4 sm:$0xff]   ;;  %v4677_v46 = vld [vmem:[#allocation11 + $0x330] ss:$40 sps:$4 sm:$0xff]  }
 0x53c   : > { %v4682_v45 = vld [vmem:[#allocation11 + $0x834] ss:$40 sps:$4 sm:$0xff]  }
 0x53d   : > { %3084 = vmatprep.mubr.bf16.mxu1 %v5392_v47  ;;  %3125 = vmatprep.mubr.bf16.mxu0 %v5394_v49 }
 0x53e   : > { %3085 = vmatmul.mubr.bf16.vlgmr.msra.gmra.mxu1 %v5396_v53  ;;  %3126 = vmatmul.mubr.bf16.vlgmr.msra.gmra.mxu0 %v5398_v54 }
 0x53f   : > { %3135 = vmatpush1.bf16.msra.mxu1 %v4599_v50  ;;  %3176 = vmatpush1.bf16.msra.mxu0 %v4602_v51  ;;  %v4680_v50 = vld [vmem:[#allocation11 + $0x830] ss:$40 sps:$4 sm:$0xff]   ;;  %v4685_v51 = vld [vmem:[#allocation11 + $0x2e4] ss:$40 sps:$4 sm:$0xff]  }
 0x540   : > { %3166 = vmatprep.mubr.bf16.mxu1 %v5392_v47  ;;  %3207 = vmatprep.mubr.bf16.mxu0 %v5394_v49 }
 0x541   : > { %3136 = vmatprep.subr.bf16.mxu1 %v4607_v55  ;;  %3177 = vmatprep.subr.bf16.mxu0 %v4610_v56  ;;  %v4688_v55 = vld [vmem:[#allocation11 + $0x7e4] ss:$40 sps:$4 sm:$0xff]   ;;  %v4683_v56 = vld [vmem:[#allocation11 + $0x2e0] ss:$40 sps:$4 sm:$0xff]  }
 0x543   : > { %3137 = vmatpush1.bf16.msra.mxu1 %v4605_v58  ;;  %3178 = vmatpush1.bf16.msra.mxu0 %v4608_v59  ;;  %v4686_v58 = vld [vmem:[#allocation11 + $0x7e0] ss:$40 sps:$4 sm:$0xff]   ;;  %v4691_v59 = vld [vmem:[#allocation11 + $0x294] ss:$40 sps:$4 sm:$0xff]  }
 0x544   : > { %3138 = vmatprep.subr.bf16.mxu1 %v4613_v60  ;;  %3179 = vmatprep.subr.bf16.mxu0 %v4616_v57  ;;  %v4694_v60 = vld [vmem:[#allocation11 + $0x794] ss:$40 sps:$4 sm:$0xff]   ;;  %v4689_v57 = vld [vmem:[#allocation11 + $0x290] ss:$40 sps:$4 sm:$0xff]  }
 0x547   : > { %3139 = vmatpush1.bf16.msra.mxu1 %v4611_v61  ;;  %3180 = vmatpush1.bf16.msra.mxu0 %v4614_v38  ;;  %v4692_v61 = vld [vmem:[#allocation11 + $0x790] ss:$40 sps:$4 sm:$0xff]   ;;  %v4697_v38 = vld [vmem:[#allocation11 + $0x24c] ss:$40 sps:$4 sm:$0xff]  }
 0x548   : > { %3140 = vmatprep.subr.bf16.mxu1 %v4619_v63  ;;  %3181 = vmatprep.subr.bf16.mxu0 %v4622_v0  ;;  %v4700_v63 = vld [vmem:[#allocation11 + $0x74c] ss:$40 sps:$4 sm:$0xff]   ;;  %v4695_v0 = vld [vmem:[#allocation11 + $0x248] ss:$40 sps:$4 sm:$0xff]  }
 0x54b   : > { %3141 = vmatpush1.bf16.msra.mxu1 %v4617_v1  ;;  %3182 = vmatpush1.bf16.msra.mxu0 %v4620_v2  ;;  %v4698_v1 = vld [vmem:[#allocation11 + $0x748] ss:$40 sps:$4 sm:$0xff]   ;;  %v4703_v2 = vld [vmem:[#allocation11 + $0x1fc] ss:$40 sps:$4 sm:$0xff]  }
 0x54c   : > { %3142 = vmatprep.subr.bf16.mxu1 %v4625_v3  ;;  %3183 = vmatprep.subr.bf16.mxu0 %v4628_v5  ;;  %v4706_v3 = vld [vmem:[#allocation11 + $0x6fc] ss:$40 sps:$4 sm:$0xff]   ;;  %v4701_v5 = vld [vmem:[#allocation11 + $0x1f8] ss:$40 sps:$4 sm:$0xff]  }
 0x54f   : > { %3143 = vmatpush1.bf16.msra.mxu1 %v4623_v6  ;;  %3184 = vmatpush1.bf16.msra.mxu0 %v4626_v8  ;;  %v4704_v6 = vld [vmem:[#allocation11 + $0x6f8] ss:$40 sps:$4 sm:$0xff]   ;;  %v4709_v8 = vld [vmem:[#allocation11 + $0x1ac] ss:$40 sps:$4 sm:$0xff]  }
 0x550   : > { %3144 = vmatprep.subr.bf16.mxu1 %v4631_v9  ;;  %3185 = vmatprep.subr.bf16.mxu0 %v4634_v10  ;;  %v4712_v9 = vld [vmem:[#allocation11 + $0x6ac] ss:$40 sps:$4 sm:$0xff]   ;;  %v4707_v10 = vld [vmem:[#allocation11 + $0x1a8] ss:$40 sps:$4 sm:$0xff]  }
 0x553   : > { %3145 = vmatpush1.bf16.msra.mxu1 %v4629_v11  ;;  %3186 = vmatpush1.bf16.msra.mxu0 %v4632_v12  ;;  %v4710_v11 = vld [vmem:[#allocation11 + $0x6a8] ss:$40 sps:$4 sm:$0xff]   ;;  %v4715_v12 = vld [vmem:[#allocation11 + $0x15c] ss:$40 sps:$4 sm:$0xff]  }
 0x554   : > { %3146 = vmatprep.subr.bf16.mxu1 %v4637_v13  ;;  %3187 = vmatprep.subr.bf16.mxu0 %v4640_v14  ;;  %v4718_v13 = vld [vmem:[#allocation11 + $0x65c] ss:$40 sps:$4 sm:$0xff]   ;;  %v4713_v14 = vld [vmem:[#allocation11 + $0x158] ss:$40 sps:$4 sm:$0xff]  }
 0x557   : > { %3147 = vmatpush1.bf16.msra.mxu1 %v4635_v15  ;;  %3188 = vmatpush1.bf16.msra.mxu0 %v4638_v16  ;;  %v4716_v15 = vld [vmem:[#allocation11 + $0x658] ss:$40 sps:$4 sm:$0xff]   ;;  %v4721_v16 = vld [vmem:[#allocation11 + $0x10c] ss:$40 sps:$4 sm:$0xff]  }
 0x558   : > { %3148 = vmatprep.subr.bf16.mxu1 %v4643_v17  ;;  %3189 = vmatprep.subr.bf16.mxu0 %v4646_v18  ;;  %v4724_v17 = vld [vmem:[#allocation11 + $0x60c] ss:$40 sps:$4 sm:$0xff]   ;;  %v4719_v18 = vld [vmem:[#allocation11 + $0x108] ss:$40 sps:$4 sm:$0xff]  }
 0x55b   : > { %3149 = vmatpush1.bf16.msra.mxu1 %v4641_v19  ;;  %3190 = vmatpush1.bf16.msra.mxu0 %v4644_v20  ;;  %v4722_v19 = vld [vmem:[#allocation11 + $0x608] ss:$40 sps:$4 sm:$0xff]   ;;  %v4727_v20 = vld [vmem:[#allocation11 + $0xbc] ss:$40 sps:$4 sm:$0xff]  }
 0x55c   : > { %3150 = vmatprep.subr.bf16.mxu1 %v4649_v21  ;;  %3191 = vmatprep.subr.bf16.mxu0 %v4652_v22  ;;  %v4730_v21 = vld [vmem:[#allocation11 + $0x5bc] ss:$40 sps:$4 sm:$0xff]   ;;  %v4725_v22 = vld [vmem:[#allocation11 + $0xb8] ss:$40 sps:$4 sm:$0xff]  }
 0x55f   : > { %3151 = vmatpush2.bf16.msra.mxu1 %v4647_v23  ;;  %3192 = vmatpush2.bf16.msra.mxu0 %v4650_v24  ;;  %v4728_v23 = vld [vmem:[#allocation11 + $0x5b8] ss:$40 sps:$4 sm:$0xff]   ;;  %v4733_v24 = vld [vmem:[#allocation11 + $0x6c] ss:$40 sps:$4 sm:$0xff]  }
 0x560   : > { %3152 = vmatprep.subr.bf16.mxu1 %v4655_v25  ;;  %3193 = vmatprep.subr.bf16.mxu0 %v4658_v26  ;;  %v4736_v25 = vld [vmem:[#allocation11 + $0x56c] ss:$40 sps:$4 sm:$0xff]   ;;  %v4731_v26 = vld [vmem:[#allocation11 + $0x68] ss:$40 sps:$4 sm:$0xff]  }
 0x563   : > { %3153 = vmatpush2.bf16.msra.mxu1 %v4653_v27  ;;  %3194 = vmatpush2.bf16.msra.mxu0 %v4656_v28  ;;  %v4734_v27 = vld [vmem:[#allocation11 + $0x568] ss:$40 sps:$4 sm:$0xff]   ;;  %v4739_v28 = vld [vmem:[#allocation11 + $0x1c] ss:$40 sps:$4 sm:$0xff]  }
 0x564   : > { %3154 = vmatprep.subr.bf16.mxu1 %v4661_v29  ;;  %3195 = vmatprep.subr.bf16.mxu0 %v4664_v30  ;;  %v4742_v29 = vld [vmem:[#allocation11 + $0x51c] ss:$40 sps:$4 sm:$0xff]   ;;  %v4737_v30 = vld [vmem:[#allocation11 + $0x18] ss:$40 sps:$4 sm:$0xff]  }
 0x567   : > { %3155 = vmatpush2.bf16.msra.mxu1 %v4659_v31  ;;  %3196 = vmatpush2.bf16.msra.mxu0 %v4662_v32  ;;  %v4740_v31 = vld [vmem:[#allocation11 + $0x518] ss:$40 sps:$4 sm:$0xff]   ;;  %v4745_v32 = vld [vmem:[#allocation11 + $0x4cc] ss:$40 sps:$4 sm:$0xff]  }
 0x568   : > { %3156 = vmatprep.subr.bf16.mxu1 %v4667_v33  ;;  %3197 = vmatprep.subr.bf16.mxu0 %v4670_v34  ;;  %v4748_v33 = vld [vmem:[#allocation11 + $0x9cc] ss:$40 sps:$4 sm:$0xff]   ;;  %v4743_v34 = vld [vmem:[#allocation11 + $0x4c8] ss:$40 sps:$4 sm:$0xff]  }
 0x56b   : > { %3157 = vmatpush2.bf16.msra.mxu1 %v4665_v35  ;;  %3198 = vmatpush2.bf16.msra.mxu0 %v4668_v36  ;;  %v4746_v35 = vld [vmem:[#allocation11 + $0x9c8] ss:$40 sps:$4 sm:$0xff]   ;;  %v4751_v36 = vld [vmem:[#allocation11 + $0x47c] ss:$40 sps:$4 sm:$0xff]  }
 0x56c   : > { %3158 = vmatprep.subr.bf16.mxu1 %v4673_v37  ;;  %3199 = vmatprep.subr.bf16.mxu0 %v4676_v39  ;;  %v4754_v37 = vld [vmem:[#allocation11 + $0x97c] ss:$40 sps:$4 sm:$0xff]   ;;  %v4749_v39 = vld [vmem:[#allocation11 + $0x478] ss:$40 sps:$4 sm:$0xff]  }
 0x56f   : > { %3159 = vmatpush2.bf16.msra.mxu1 %v4671_v41  ;;  %3200 = vmatpush2.bf16.msra.mxu0 %v4674_v42  ;;  %v4752_v41 = vld [vmem:[#allocation11 + $0x978] ss:$40 sps:$4 sm:$0xff]   ;;  %v4757_v42 = vld [vmem:[#allocation11 + $0x42c] ss:$40 sps:$4 sm:$0xff]  }
 0x570   : > { %3160 = vmatprep.subr.bf16.mxu1 %v4679_v44  ;;  %3201 = vmatprep.subr.bf16.mxu0 %v4682_v45  ;;  %v4760_v44 = vld [vmem:[#allocation11 + $0x92c] ss:$40 sps:$4 sm:$0xff]   ;;  %v4755_v45 = vld [vmem:[#allocation11 + $0x428] ss:$40 sps:$4 sm:$0xff]  }
 0x573   : > { %3161 = vmatpush2.bf16.msra.mxu1 %v4677_v46  ;;  %3202 = vmatpush2.bf16.msra.mxu0 %v4680_v50  ;;  %v4758_v46 = vld [vmem:[#allocation11 + $0x928] ss:$40 sps:$4 sm:$0xff]   ;;  %v4763_v50 = vld [vmem:[#allocation11 + $0x3dc] ss:$40 sps:$4 sm:$0xff]  }
 0x574   : > { %3162 = vmatprep.subr.bf16.mxu1 %v4685_v51  ;;  %3203 = vmatprep.subr.bf16.mxu0 %v4688_v55  ;;  %v4766_v51 = vld [vmem:[#allocation11 + $0x8dc] ss:$40 sps:$4 sm:$0xff]   ;;  %v4761_v55 = vld [vmem:[#allocation11 + $0x3d8] ss:$40 sps:$4 sm:$0xff]  }
 0x577   : > { %3163 = vmatpush2.bf16.msra.mxu1 %v4683_v56  ;;  %3204 = vmatpush2.bf16.msra.mxu0 %v4686_v58  ;;  %v4764_v56 = vld [vmem:[#allocation11 + $0x8d8] ss:$40 sps:$4 sm:$0xff]   ;;  %v4769_v58 = vld [vmem:[#allocation11 + $0x38c] ss:$40 sps:$4 sm:$0xff]  }
 0x578   : > { %3164 = vmatprep.subr.bf16.mxu1 %v4691_v59  ;;  %3205 = vmatprep.subr.bf16.mxu0 %v4694_v60  ;;  %v4772_v59 = vld [vmem:[#allocation11 + $0x88c] ss:$40 sps:$4 sm:$0xff]   ;;  %v4767_v60 = vld [vmem:[#allocation11 + $0x388] ss:$40 sps:$4 sm:$0xff]  }
 0x57b   : > { %3165 = vmatpush2.bf16.msra.mxu1 %v4689_v57  ;;  %3206 = vmatpush2.bf16.msra.mxu0 %v4692_v61  ;;  %v4770_v57 = vld [vmem:[#allocation11 + $0x888] ss:$40 sps:$4 sm:$0xff]   ;;  %v4775_v61 = vld [vmem:[#allocation11 + $0x33c] ss:$40 sps:$4 sm:$0xff]  }
 0x57c   : > { %3216 = vmatprep.subr.bf16.mxu1 %v4697_v38  ;;  %3257 = vmatprep.subr.bf16.mxu0 %v4700_v63  ;;  %v4778_v38 = vld [vmem:[#allocation11 + $0x83c] ss:$40 sps:$4 sm:$0xff]   ;;  %v4773_v63 = vld [vmem:[#allocation11 + $0x338] ss:$40 sps:$4 sm:$0xff]  }
 0x57e   : > { %3167 = vmatmul.mubr.bf16.vlgmr.msra.gmra.mxu1 %v5396_v53  ;;  %3208 = vmatmul.mubr.bf16.vlgmr.msra.gmra.mxu0 %v5398_v54 }
 0x57f   : > { %3217 = vmatpush1.bf16.msra.mxu1 %v4695_v0  ;;  %3248 = vmatprep.mubr.bf16.mxu1 %v5392_v47  ;;  %v4776_v0 = vld [vmem:[#allocation11 + $0x838] ss:$40 sps:$4 sm:$0xff]  }
 0x580   : > { %3258 = vmatpush1.bf16.msra.mxu0 %v4698_v1  ;;  %3289 = vmatprep.mubr.bf16.mxu0 %v5394_v49  ;;  %v4781_v1 = vld [vmem:[#allocation11 + $0x2ec] ss:$40 sps:$4 sm:$0xff]  }
 0x581   : > { %3218 = vmatprep.subr.bf16.mxu1 %v4703_v2  ;;  %3259 = vmatprep.subr.bf16.mxu0 %v4706_v3  ;;  %v4784_v2 = vld [vmem:[#allocation11 + $0x7ec] ss:$40 sps:$4 sm:$0xff]   ;;  %v4779_v3 = vld [vmem:[#allocation11 + $0x2e8] ss:$40 sps:$4 sm:$0xff]  }
 0x583   : > { %3219 = vmatpush1.bf16.msra.mxu1 %v4701_v5  ;;  %v4782_v5 = vld [vmem:[#allocation11 + $0x7e8] ss:$40 sps:$4 sm:$0xff]  }
 0x584   : > { %3260 = vmatpush1.bf16.msra.mxu0 %v4704_v6  ;;  %3220 = vmatprep.subr.bf16.mxu1 %v4709_v8  ;;  %v4787_v6 = vld [vmem:[#allocation11 + $0x29c] ss:$40 sps:$4 sm:$0xff]  }
 0x585   : > { %3261 = vmatprep.subr.bf16.mxu0 %v4712_v9  ;;  %v4790_v8 = vld [vmem:[#allocation11 + $0x79c] ss:$40 sps:$4 sm:$0xff]   ;;  %v4785_v9 = vld [vmem:[#allocation11 + $0x298] ss:$40 sps:$4 sm:$0xff]  }
 0x587   : > { %3221 = vmatpush1.bf16.msra.mxu1 %v4707_v10  ;;  %v4788_v10 = vld [vmem:[#allocation11 + $0x798] ss:$40 sps:$4 sm:$0xff]  }
 0x588   : > { %3262 = vmatpush1.bf16.msra.mxu0 %v4710_v11  ;;  %3222 = vmatprep.subr.bf16.mxu1 %v4715_v12  ;;  %v4793_v11 = vld [vmem:[#allocation11 + $0x254] ss:$40 sps:$4 sm:$0xff]  }
 0x589   : > { %3263 = vmatprep.subr.bf16.mxu0 %v4718_v13  ;;  %v4796_v12 = vld [vmem:[#allocation11 + $0x754] ss:$40 sps:$4 sm:$0xff]   ;;  %v4791_v13 = vld [vmem:[#allocation11 + $0x250] ss:$40 sps:$4 sm:$0xff]  }
 0x58b   : > { %3223 = vmatpush1.bf16.msra.mxu1 %v4713_v14  ;;  %v4794_v14 = vld [vmem:[#allocation11 + $0x750] ss:$40 sps:$4 sm:$0xff]  }
 0x58c   : > { %3264 = vmatpush1.bf16.msra.mxu0 %v4716_v15  ;;  %3224 = vmatprep.subr.bf16.mxu1 %v4721_v16  ;;  %v4799_v15 = vld [vmem:[#allocation11 + $0x204] ss:$40 sps:$4 sm:$0xff]  }
 0x58d   : > { %3265 = vmatprep.subr.bf16.mxu0 %v4724_v17  ;;  %v4802_v16 = vld [vmem:[#allocation11 + $0x704] ss:$40 sps:$4 sm:$0xff]   ;;  %v4797_v17 = vld [vmem:[#allocation11 + $0x200] ss:$40 sps:$4 sm:$0xff]  }
 0x58f   : > { %3225 = vmatpush1.bf16.msra.mxu1 %v4719_v18  ;;  %v4800_v18 = vld [vmem:[#allocation11 + $0x700] ss:$40 sps:$4 sm:$0xff]  }
 0x590   : > { %3266 = vmatpush1.bf16.msra.mxu0 %v4722_v19  ;;  %3226 = vmatprep.subr.bf16.mxu1 %v4727_v20  ;;  %v4805_v19 = vld [vmem:[#allocation11 + $0x1b4] ss:$40 sps:$4 sm:$0xff]  }
 0x591   : > { %3267 = vmatprep.subr.bf16.mxu0 %v4730_v21  ;;  %v4808_v20 = vld [vmem:[#allocation11 + $0x6b4] ss:$40 sps:$4 sm:$0xff]   ;;  %v4803_v21 = vld [vmem:[#allocation11 + $0x1b0] ss:$40 sps:$4 sm:$0xff]  }
 0x593   : > { %3227 = vmatpush1.bf16.msra.mxu1 %v4725_v22  ;;  %v4806_v22 = vld [vmem:[#allocation11 + $0x6b0] ss:$40 sps:$4 sm:$0xff]  }
 0x594   : > { %3268 = vmatpush1.bf16.msra.mxu0 %v4728_v23  ;;  %3228 = vmatprep.subr.bf16.mxu1 %v4733_v24  ;;  %v4811_v23 = vld [vmem:[#allocation11 + $0x164] ss:$40 sps:$4 sm:$0xff]  }
 0x595   : > { %3269 = vmatprep.subr.bf16.mxu0 %v4736_v25  ;;  %v4814_v24 = vld [vmem:[#allocation11 + $0x664] ss:$40 sps:$4 sm:$0xff]   ;;  %v4809_v25 = vld [vmem:[#allocation11 + $0x160] ss:$40 sps:$4 sm:$0xff]  }
 0x597   : > { %3229 = vmatpush1.bf16.msra.mxu1 %v4731_v26  ;;  %v4817_v26 = vld [vmem:[#allocation11 + $0x114] ss:$40 sps:$4 sm:$0xff]  }
 0x598   : > { %3270 = vmatpush1.bf16.msra.mxu0 %v4734_v27  ;;  %3230 = vmatprep.subr.bf16.mxu1 %v4739_v28  ;;  %v4820_v27 = vld [vmem:[#allocation11 + $0x614] ss:$40 sps:$4 sm:$0xff]   ;;  %v4818_v28 = vld [vmem:[#allocation11 + $0x610] ss:$40 sps:$4 sm:$0xff]  }
 0x599   : > { %3271 = vmatprep.subr.bf16.mxu0 %v4742_v29  ;;  %v4823_v29 = vld [vmem:[#allocation11 + $0xc4] ss:$40 sps:$4 sm:$0xff]  }
 0x59b   : > { %3231 = vmatpush1.bf16.msra.mxu1 %v4737_v30  ;;  %v4826_v30 = vld [vmem:[#allocation11 + $0x5c4] ss:$40 sps:$4 sm:$0xff]  }
 0x59c   : > { %3272 = vmatpush1.bf16.msra.mxu0 %v4740_v31  ;;  %3232 = vmatprep.subr.bf16.mxu1 %v4745_v32  ;;  %v4821_v31 = vld [vmem:[#allocation11 + $0xc0] ss:$40 sps:$4 sm:$0xff]  }
 0x59d   : > { %3273 = vmatprep.subr.bf16.mxu0 %v4748_v33  ;;  %v4824_v32 = vld [vmem:[#allocation11 + $0x5c0] ss:$40 sps:$4 sm:$0xff]   ;;  %v4829_v33 = vld [vmem:[#allocation11 + $0x74] ss:$40 sps:$4 sm:$0xff]  }
 0x59f   : > { %3233 = vmatpush2.bf16.msra.mxu1 %v4743_v34  ;;  %v4832_v34 = vld [vmem:[#allocation11 + $0x574] ss:$40 sps:$4 sm:$0xff]  }
 0x5a0   : > { %3274 = vmatpush2.bf16.msra.mxu0 %v4746_v35  ;;  %3234 = vmatprep.subr.bf16.mxu1 %v4751_v36  ;;  %v4827_v35 = vld [vmem:[#allocation11 + $0x70] ss:$40 sps:$4 sm:$0xff]  }
 0x5a1   : > { %3275 = vmatprep.subr.bf16.mxu0 %v4754_v37  ;;  %v4830_v36 = vld [vmem:[#allocation11 + $0x570] ss:$40 sps:$4 sm:$0xff]   ;;  %v4835_v37 = vld [vmem:[#allocation11 + $0x24] ss:$40 sps:$4 sm:$0xff]  }
 0x5a3   : > { %3235 = vmatpush2.bf16.msra.mxu1 %v4749_v39  ;;  %v4838_v39 = vld [vmem:[#allocation11 + $0x524] ss:$40 sps:$4 sm:$0xff]  }
 0x5a4   : > { %3276 = vmatpush2.bf16.msra.mxu0 %v4752_v41  ;;  %3236 = vmatprep.subr.bf16.mxu1 %v4757_v42  ;;  %v4833_v41 = vld [vmem:[#allocation11 + $0x20] ss:$40 sps:$4 sm:$0xff]  }
 0x5a5   : > { %3277 = vmatprep.subr.bf16.mxu0 %v4760_v44  ;;  %v4836_v42 = vld [vmem:[#allocation11 + $0x520] ss:$40 sps:$4 sm:$0xff]   ;;  %v4841_v44 = vld [vmem:[#allocation11 + $0x4d4] ss:$40 sps:$4 sm:$0xff]  }
 0x5a7   : > { %3237 = vmatpush2.bf16.msra.mxu1 %v4755_v45  ;;  %v4844_v45 = vld [vmem:[#allocation11 + $0x9d4] ss:$40 sps:$4 sm:$0xff]  }
 0x5a8   : > { %3278 = vmatpush2.bf16.msra.mxu0 %v4758_v46  ;;  %3238 = vmatprep.subr.bf16.mxu1 %v4763_v50  ;;  %v4839_v46 = vld [vmem:[#allocation11 + $0x4d0] ss:$40 sps:$4 sm:$0xff]  }
 0x5a9   : > { %3279 = vmatprep.subr.bf16.mxu0 %v4766_v51  ;;  %v4842_v50 = vld [vmem:[#allocation11 + $0x9d0] ss:$40 sps:$4 sm:$0xff]   ;;  %v4847_v51 = vld [vmem:[#allocation11 + $0x484] ss:$40 sps:$4 sm:$0xff]  }
 0x5ab   : > { %3239 = vmatpush2.bf16.msra.mxu1 %v4761_v55  ;;  %v4850_v55 = vld [vmem:[#allocation11 + $0x984] ss:$40 sps:$4 sm:$0xff]  }
 0x5ac   : > { %3280 = vmatpush2.bf16.msra.mxu0 %v4764_v56  ;;  %3240 = vmatprep.subr.bf16.mxu1 %v4769_v58  ;;  %v4845_v56 = vld [vmem:[#allocation11 + $0x480] ss:$40 sps:$4 sm:$0xff]  }
 0x5ad   : > { %3281 = vmatprep.subr.bf16.mxu0 %v4772_v59  ;;  %v4848_v58 = vld [vmem:[#allocation11 + $0x980] ss:$40 sps:$4 sm:$0xff]   ;;  %v4853_v59 = vld [vmem:[#allocation11 + $0x434] ss:$40 sps:$4 sm:$0xff]  }
 0x5af   : > { %3241 = vmatpush2.bf16.msra.mxu1 %v4767_v60  ;;  %v4856_v60 = vld [vmem:[#allocation11 + $0x934] ss:$40 sps:$4 sm:$0xff]  }
 0x5b0   : > { %3282 = vmatpush2.bf16.msra.mxu0 %v4770_v57  ;;  %3242 = vmatprep.subr.bf16.mxu1 %v4775_v61  ;;  %v4851_v57 = vld [vmem:[#allocation11 + $0x430] ss:$40 sps:$4 sm:$0xff]  }
 0x5b1   : > { %3283 = vmatprep.subr.bf16.mxu0 %v4778_v38  ;;  %v4854_v61 = vld [vmem:[#allocation11 + $0x930] ss:$40 sps:$4 sm:$0xff]   ;;  %v4859_v38 = vld [vmem:[#allocation11 + $0x3e4] ss:$40 sps:$4 sm:$0xff]  }
 0x5b3   : > { %3243 = vmatpush2.bf16.msra.mxu1 %v4773_v63  ;;  %v4862_v63 = vld [vmem:[#allocation11 + $0x8e4] ss:$40 sps:$4 sm:$0xff]  }
 0x5b4   : > { %3284 = vmatpush2.bf16.msra.mxu0 %v4776_v0  ;;  %3244 = vmatprep.subr.bf16.mxu1 %v4781_v1  ;;  %v4857_v0 = vld [vmem:[#allocation11 + $0x3e0] ss:$40 sps:$4 sm:$0xff]  }
 0x5b5   : > { %3285 = vmatprep.subr.bf16.mxu0 %v4784_v2  ;;  %v4860_v1 = vld [vmem:[#allocation11 + $0x8e0] ss:$40 sps:$4 sm:$0xff]   ;;  %v4865_v2 = vld [vmem:[#allocation11 + $0x394] ss:$40 sps:$4 sm:$0xff]  }
 0x5b7   : > { %3245 = vmatpush2.bf16.msra.mxu1 %v4779_v3  ;;  %v4868_v3 = vld [vmem:[#allocation11 + $0x894] ss:$40 sps:$4 sm:$0xff]  }
 0x5b8   : > { %3286 = vmatpush2.bf16.msra.mxu0 %v4782_v5  ;;  %3246 = vmatprep.subr.bf16.mxu1 %v4787_v6  ;;  %v4863_v5 = vld [vmem:[#allocation11 + $0x390] ss:$40 sps:$4 sm:$0xff]  }
 0x5b9   : > { %3287 = vmatprep.subr.bf16.mxu0 %v4790_v8  ;;  %v4866_v6 = vld [vmem:[#allocation11 + $0x890] ss:$40 sps:$4 sm:$0xff]   ;;  %v4871_v8 = vld [vmem:[#allocation11 + $0x344] ss:$40 sps:$4 sm:$0xff]  }
 0x5bb   : > { %3247 = vmatpush2.bf16.msra.mxu1 %v4785_v9  ;;  %v4874_v9 = vld [vmem:[#allocation11 + $0x844] ss:$40 sps:$4 sm:$0xff]  }
 0x5bc   : > { %3288 = vmatpush2.bf16.msra.mxu0 %v4788_v10  ;;  %3298 = vmatprep.subr.bf16.mxu1 %v4793_v11  ;;  %v4869_v10 = vld [vmem:[#allocation11 + $0x340] ss:$40 sps:$4 sm:$0xff]  }
 0x5bd   : > { %3339 = vmatprep.subr.bf16.mxu0 %v4796_v12  ;;  %v4872_v11 = vld [vmem:[#allocation11 + $0x840] ss:$40 sps:$4 sm:$0xff]   ;;  %v4877_v12 = vld [vmem:[#allocation11 + $0x2f4] ss:$40 sps:$4 sm:$0xff]  }
 0x5be   : > { %3249 = vmatmul.mubr.bf16.vlgmr.msra.gmra.mxu1 %v5396_v53 }
 0x5bf   : > { %3290 = vmatmul.mubr.bf16.vlgmr.msra.gmra.mxu0 %v5398_v54  ;;  %3299 = vmatpush1.bf16.msra.mxu1 %v4791_v13  ;;  %v4880_v13 = vld [vmem:[#allocation11 + $0x7f4] ss:$40 sps:$4 sm:$0xff]  }
 0x5c0   : > { %3330 = vmatprep.mubr.bf16.mxu1 %v5392_v47  ;;  %3340 = vmatpush1.bf16.msra.mxu0 %v4794_v14  ;;  %v4812_v47 = vld [vmem:[#allocation11 + $0x660] ss:$40 sps:$4 sm:$0xff]   ;;  %v4875_v14 = vld [vmem:[#allocation11 + $0x2f0] ss:$40 sps:$4 sm:$0xff]  }
 0x5c1   : > { %3371 = vmatprep.mubr.bf16.mxu0 %v5394_v49  ;;  %3300 = vmatprep.subr.bf16.mxu1 %v4799_v15  ;;  %v4815_v49 = vld [vmem:[#allocation11 + $0x110] ss:$40 sps:$4 sm:$0xff]  }
 0x5c2   : > { %3341 = vmatprep.subr.bf16.mxu0 %v4802_v16  ;;  %v4878_v15 = vld [vmem:[#allocation11 + $0x7f0] ss:$40 sps:$4 sm:$0xff]   ;;  %v4883_v16 = vld [vmem:[#allocation11 + $0x2a4] ss:$40 sps:$4 sm:$0xff]  }
 0x5c3   : > { %3301 = vmatpush1.bf16.msra.mxu1 %v4797_v17  ;;  %v4886_v17 = vld [vmem:[#allocation11 + $0x7a4] ss:$40 sps:$4 sm:$0xff]  }
 0x5c4   : > { %3342 = vmatpush1.bf16.msra.mxu0 %v4800_v18  ;;  %3302 = vmatprep.subr.bf16.mxu1 %v4805_v19  ;;  %v4881_v18 = vld [vmem:[#allocation11 + $0x2a0] ss:$40 sps:$4 sm:$0xff]  }
 0x5c5   : > { %3343 = vmatprep.subr.bf16.mxu0 %v4808_v20  ;;  %v4884_v19 = vld [vmem:[#allocation11 + $0x7a0] ss:$40 sps:$4 sm:$0xff]  }
 0x5c6   : > { %v5414_v20 = vld [vmem:[#allocation12 + $0x8] sm:$0xff] }
 0x5c7   : > { %3303 = vmatpush1.bf16.msra.mxu1 %v4803_v21  ;;  %v3015_v21 = vrot.slane %v5414_v20, %v5349_v7 }
 0x5c8   : > { %3344 = vmatpush1.bf16.msra.mxu0 %v4806_v22  ;;  %3304 = vmatprep.subr.bf16.mxu1 %v4811_v23  ;;  %v3019_v22 = vrot.slane %v5414_v20, %v5332_v48 }
 0x5c9   : > { %3345 = vmatprep.subr.bf16.mxu0 %v4814_v24 }
 0x5cb   : > { %3305 = vmatpush1.bf16.msra.mxu1 %v4809_v25 }
 0x5cc   : > { %3346 = vmatpush1.bf16.msra.mxu0 %v4812_v47  ;;  %3306 = vmatprep.subr.bf16.mxu1 %v4817_v26 }
 0x5cd   : > { %3347 = vmatprep.subr.bf16.mxu0 %v4820_v27 }
 0x5cf   : > { %3307 = vmatpush1.bf16.msra.mxu1 %v4815_v49 }
 0x5d0   : > { %3348 = vmatpush1.bf16.msra.mxu0 %v4818_v28  ;;  %3308 = vmatprep.subr.bf16.mxu1 %v4823_v29 }
 0x5d1   : > { %3349 = vmatprep.subr.bf16.mxu0 %v4826_v30 }
 0x5d3   : > { %3309 = vmatpush1.bf16.msra.mxu1 %v4821_v31 }
 0x5d4   : > { %3350 = vmatpush1.bf16.msra.mxu0 %v4824_v32  ;;  %3310 = vmatprep.subr.bf16.mxu1 %v4829_v33  ;;  %v4887_v33 = vld [vmem:[#allocation9 + $0x160] ss:$24 sps:$4 sm:$0xff]  }
 0x5d5   : > { %3351 = vmatprep.subr.bf16.mxu0 %v4832_v34  ;;  %v4889_v34 = vld [vmem:[#allocation9 + $0x164] ss:$24 sps:$4 sm:$0xff]  }
 0x5d7   : > { %3311 = vmatpush1.bf16.msra.mxu1 %v4827_v35  ;;  %v4892_v35 = vld [vmem:[#allocation9 + $0x134] ss:$24 sps:$4 sm:$0xff]  }
 0x5d8   : > { %3352 = vmatpush1.bf16.msra.mxu0 %v4830_v36  ;;  %3312 = vmatprep.subr.bf16.mxu1 %v4835_v37  ;;  %v4893_v36 = vld [vmem:[#allocation9 + $0x100] ss:$24 sps:$4 sm:$0xff]   ;;  %v4898_v37 = vld [vmem:[#allocation9 + $0xd4] ss:$24 sps:$4 sm:$0xff]  }
 0x5d9   : > { %3353 = vmatprep.subr.bf16.mxu0 %v4838_v39  ;;  %v4896_v39 = vld [vmem:[#allocation9 + $0xd0] ss:$24 sps:$4 sm:$0xff]  }
 0x5db   : > { %3313 = vmatpush1.bf16.msra.mxu1 %v4833_v41  ;;  %v4901_v41 = vld [vmem:[#allocation9 + $0xa4] ss:$24 sps:$4 sm:$0xff]  }
 0x5dc   : > { %3354 = vmatpush1.bf16.msra.mxu0 %v4836_v42  ;;  %3314 = vmatprep.subr.bf16.mxu1 %v4841_v44  ;;  %v4899_v42 = vld [vmem:[#allocation9 + $0xa0] ss:$24 sps:$4 sm:$0xff]  }
 0x5dd   : > { %3355 = vmatprep.subr.bf16.mxu0 %v4844_v45 }
 0x5df   : > { %3315 = vmatpush2.bf16.msra.mxu1 %v4839_v46  ;;  %v4904_v46 = vld [vmem:[#allocation9 + $0x74] ss:$24 sps:$4 sm:$0xff]  }
 0x5e0   : > { %3356 = vmatpush2.bf16.msra.mxu0 %v4842_v50  ;;  %3316 = vmatprep.subr.bf16.mxu1 %v4847_v51  ;;  %v4902_v50 = vld [vmem:[#allocation9 + $0x70] ss:$24 sps:$4 sm:$0xff]  }
 0x5e1   : > { %3357 = vmatprep.subr.bf16.mxu0 %v4850_v55 }
 0x5e3   : > { %3317 = vmatpush2.bf16.msra.mxu1 %v4845_v56 }
 0x5e4   : > { %3358 = vmatpush2.bf16.msra.mxu0 %v4848_v58  ;;  %3318 = vmatprep.subr.bf16.mxu1 %v4853_v59  ;;  %v4907_v59 = vld [vmem:[#allocation9 + $0x44] ss:$24 sps:$4 sm:$0xff]  }
 0x5e5   : > { %3359 = vmatprep.subr.bf16.mxu0 %v4856_v60  ;;  %v4905_v60 = vld [vmem:[#allocation9 + $0x40] ss:$24 sps:$4 sm:$0xff]  }
 0x5e7   : > { %3319 = vmatpush2.bf16.msra.mxu1 %v4851_v57 }
 0x5e8   : > { %3360 = vmatpush2.bf16.msra.mxu0 %v4854_v61  ;;  %3320 = vmatprep.subr.bf16.mxu1 %v4859_v38  ;;  %v4910_v38 = vld [vmem:[#allocation9 + $0x14] ss:$24 sps:$4 sm:$0xff]  }
 0x5e9   : > { %3361 = vmatprep.subr.bf16.mxu0 %v4862_v63  ;;  %v4908_v63 = vld [vmem:[#allocation9 + $0x10] ss:$24 sps:$4 sm:$0xff]  }
 0x5eb   : > { %3321 = vmatpush2.bf16.msra.mxu1 %v4857_v0  ;;  %v4913_v0 = vld [vmem:[#allocation9 + $0x2e4] ss:$24 sps:$4 sm:$0xff]  }
 0x5ec   : > { %3362 = vmatpush2.bf16.msra.mxu0 %v4860_v1  ;;  %3322 = vmatprep.subr.bf16.mxu1 %v4865_v2  ;;  %v4911_v1 = vld [vmem:[#allocation9 + $0x2e0] ss:$24 sps:$4 sm:$0xff]   ;;  %v4916_v2 = vld [vmem:[#allocation9 + $0x2b4] ss:$24 sps:$4 sm:$0xff]  }
 0x5ed   : > { %3363 = vmatprep.subr.bf16.mxu0 %v4868_v3  ;;  %v4914_v3 = vld [vmem:[#allocation9 + $0x2b0] ss:$24 sps:$4 sm:$0xff]  }
 0x5ef   : > { %3323 = vmatpush2.bf16.msra.mxu1 %v4863_v5  ;;  %v4919_v5 = vld [vmem:[#allocation9 + $0x284] ss:$24 sps:$4 sm:$0xff]  }
 0x5f0   : > { %3364 = vmatpush2.bf16.msra.mxu0 %v4866_v6  ;;  %3324 = vmatprep.subr.bf16.mxu1 %v4871_v8  ;;  %v4917_v6 = vld [vmem:[#allocation9 + $0x280] ss:$24 sps:$4 sm:$0xff]   ;;  %v4922_v8 = vld [vmem:[#allocation9 + $0x254] ss:$24 sps:$4 sm:$0xff]  }
 0x5f1   : > { %3365 = vmatprep.subr.bf16.mxu0 %v4874_v9  ;;  %v4920_v9 = vld [vmem:[#allocation9 + $0x250] ss:$24 sps:$4 sm:$0xff]  }
 0x5f3   : > { %3325 = vmatpush2.bf16.msra.mxu1 %v4869_v10  ;;  %v4925_v10 = vld [vmem:[#allocation9 + $0x224] ss:$24 sps:$4 sm:$0xff]  }
 0x5f4   : > { %3366 = vmatpush2.bf16.msra.mxu0 %v4872_v11  ;;  %3326 = vmatprep.subr.bf16.mxu1 %v4877_v12  ;;  %v4923_v11 = vld [vmem:[#allocation9 + $0x220] ss:$24 sps:$4 sm:$0xff]   ;;  %v4928_v12 = vld [vmem:[#allocation9 + $0x1f4] ss:$24 sps:$4 sm:$0xff]  }
 0x5f5   : > { %3367 = vmatprep.subr.bf16.mxu0 %v4880_v13  ;;  %v3023_v13 = vrot.slane %v5414_v20, %v5375_v4 }
 0x5f7   : > { %3327 = vmatpush2.bf16.msra.mxu1 %v4875_v14  ;;  %v4926_v14 = vld [vmem:[#allocation9 + $0x1f0] ss:$24 sps:$4 sm:$0xff]  }
 0x5f8   : > { %3368 = vmatpush2.bf16.msra.mxu0 %v4878_v15  ;;  %3328 = vmatprep.subr.bf16.mxu1 %v4883_v16  ;;  %v3027_v15 = vrot.slane %v5414_v20, %v1721_v40  ;;  %v4931_v16 = vld [vmem:[#allocation9 + $0x1c4] ss:$24 sps:$4 sm:$0xff]  }
 0x5f9   : > { %3369 = vmatprep.subr.bf16.mxu0 %v4886_v17 }
 0x5fb   : > { %3329 = vmatpush2.bf16.msra.mxu1 %v4881_v18  ;;  %v4929_v18 = vld [vmem:[#allocation9 + $0x1c0] ss:$24 sps:$4 sm:$0xff]  }
 0x5fc   : > { %3370 = vmatpush2.bf16.msra.mxu0 %v4884_v19  ;;  %3650 = vmatprep.subr.bf16.mxu1 %v4889_v34 }
 0x5fe   : > { %3331 = vmatmul.mubr.bf16.vlgmr.msra.gmra.mxu1 %v5396_v53  ;;  %v3086_v23 = vpop.f32.mrf.mxu1  ;;  %v3127_v24 = vpop.f32.mrf.mxu0  ;;  %v4890_v53 = vld [vmem:[#allocation9 + $0x130] ss:$24 sps:$4 sm:$0xff]  }
 0x5ff   : > { %3372 = vmatmul.mubr.bf16.vlgmr.msra.gmra.mxu0 %v5398_v54  ;;  %v3087_v25 = vadd.f32 %v3086_v23, %v3015_v21  ;;  %3651 = vmatpush1.bf16.msra.mxu1 %v4887_v33  ;;  %v4895_v54 = vld [vmem:[#allocation9 + $0x104] ss:$24 sps:$4 sm:$0xff]   ;;  %v4934_v21 = vld [vmem:[#allocation9 + $0x194] ss:$24 sps:$4 sm:$0xff]   ;;  %v4932_v23 = vld [vmem:[#allocation9 + $0x190] ss:$24 sps:$4 sm:$0xff]  }
 0x600   : > { %v3088_v47 = vpop.f32.mrf.mxu1  ;;  %v3129_v26 = vpop.f32.mrf.mxu0  ;;  %3652 = vmatprep.subr.bf16.mxu1 %v4892_v35 }
 0x601   : > { %v5422_v27 = vadd.f32 %v3127_v24, %v3087_v25  ;;  %v3089_v49 = vadd.f32 %v3088_v47, %v3019_v22 }
 0x602   : > { %v3090_v28 = vpop.f32.mrf.mxu1  ;;  %v3131_v29 = vpop.f32.mrf.mxu0 }
 0x603   : > { %v5424_v30 = vadd.f32 %v3129_v26, %v3089_v49  ;;  %3653 = vmatpush1.bf16.msra.mxu1 %v4890_v53  ;;  %v4210_v4 = vmul.f32 -1.442695, %v5422_v27  ;;  %v3030_v26 = vsub.s32 4, %v5329_v43  ;;  %v3034_v28 = vsub.s32 5, %v5329_v43 }
 0x604   : > { %v3091_v31 = vpop.f32.mrf.mxu1  ;;  %v3132_v32 = vpop.f32.mrf.mxu0  ;;  %3654 = vmatprep.subr.bf16.mxu1 %v4895_v54 }
 0x605   : > { %4939 = vpow2.f32 %v4210_v4  ;;  %v4211_v40 = vmul.f32 -1.442695, %v5424_v30  ;;  %v3031_v32 = vrot.slane %v5414_v20, %v3030_v26  ;;  %v3035_v35 = vrot.slane %v5414_v20, %v3034_v28 }
 0x607   : > { %3655 = vmatpush1.bf16.msra.mxu1 %v4893_v36 }
 0x608   : > { %3656 = vmatprep.subr.bf16.mxu1 %v4898_v37 }
 0x60b   : > { %3657 = vmatpush1.bf16.msra.mxu1 %v4896_v39 }
 0x60c   : > { %3658 = vmatprep.subr.bf16.mxu1 %v4901_v41 }
 0x60f   : > { %3659 = vmatpush1.bf16.msra.mxu1 %v4899_v42 }
 0x610   : > { %3660 = vmatprep.subr.bf16.mxu1 %v4904_v46 }
 0x612   : > { %v4940_v49 = vpop.eup %4939 }
 0x613   : > { %3661 = vmatpush1.bf16.msra.mxu1 %v4902_v50  ;;  %v3386_v33 = vadd.f32 1.0, %v4940_v49 }
 0x614   : > { %3662 = vmatprep.subr.bf16.mxu1 %v4907_v59 }
 0x617   : > { %3663 = vmatpush1.bf16.msra.mxu1 %v4905_v60 }
 0x618   : > { %3664 = vmatprep.subr.bf16.mxu1 %v4910_v38 }
 0x61b   : > { %3665 = vmatpush1.bf16.msra.mxu1 %v4908_v63 }
 0x61c   : > { %3666 = vmatprep.subr.bf16.mxu1 %v4913_v0 }
 0x61f   : > { %3667 = vmatpush2.bf16.msra.mxu1 %v4911_v1 }
 0x620   : > { %3668 = vmatprep.subr.bf16.mxu1 %v4916_v2 }
 0x623   : > { %3669 = vmatpush2.bf16.msra.mxu1 %v4914_v3 }
 0x624   : > { %3670 = vmatprep.subr.bf16.mxu1 %v4919_v5 }
 0x627   : > { %3671 = vmatpush2.bf16.msra.mxu1 %v4917_v6 }
 0x628   : > { %3672 = vmatprep.subr.bf16.mxu1 %v4922_v8 }
 0x62b   : > { %3673 = vmatpush2.bf16.msra.mxu1 %v4920_v9 }
 0x62c   : > { %3674 = vmatprep.subr.bf16.mxu1 %v4925_v10 }
 0x62f   : > { %3675 = vmatpush2.bf16.msra.mxu1 %v4923_v11 }
 0x630   : > { %3676 = vmatprep.subr.bf16.mxu1 %v4928_v12  ;;  %v3038_v12 = vsub.s32 6, %v5329_v43 }
 0x633   : > { %3677 = vmatpush2.bf16.msra.mxu1 %v4926_v14  ;;  %v3039_v14 = vrot.slane %v5414_v20, %v3038_v12 }
 0x634   : > { %3678 = vmatprep.subr.bf16.mxu1 %v4931_v16 }
 0x637   : > { %3679 = vmatpush2.bf16.msra.mxu1 %v4929_v18 }
 0x638   : > { %3680 = vmatprep.subr.bf16.mxu1 %v4934_v21 }
 0x63b   : > { %3681 = vmatpush2.bf16.msra.mxu1 %v4932_v23 }
 0x63e   : > { %v3168_v44 = vpop.f32.mrf.mxu1  ;;  %v3209_v45 = vpop.f32.mrf.mxu0 }
 0x63f   : > { %v3169_v17 = vadd.f32 %v3168_v44, %v3023_v13  ;;  %v3042_v13 = vsub.s32 7, %v5329_v43 }
 0x640   : > { %v3170_v51 = vpop.f32.mrf.mxu1  ;;  %v3211_v55 = vpop.f32.mrf.mxu0 }
 0x641   : > { %v3171_v19 = vadd.f32 %v3170_v51, %v3027_v15  ;;  %v3210_v22 = vadd.f32 %v3209_v45, %v3169_v17  ;;  %v3043_v15 = vrot.slane %v5414_v20, %v3042_v13 }
 0x642   : > { %v3172_v56 = vpop.f32.mrf.mxu1  ;;  %v3213_v58 = vpop.f32.mrf.mxu0 }
 0x643   : > { %v3212_v24 = vadd.f32 %v3211_v55, %v3171_v19  ;;  %v4212_v25 = vmul.f32 -1.442695, %v3210_v22  ;;  %v324_v56 = vld [vmem:[#allocation2 + $0x1] ss:$2 sm:$0x3] }
 0x644   : > { %v3173_v57 = vpop.f32.mrf.mxu1  ;;  %v3214_v61 = vpop.f32.mrf.mxu0 }
 0x645   : > { %v4213_v47 = vmul.f32 -1.442695, %v3212_v24  ;;  %4941 = vpow2.f32 %v4212_v25  ;;  %v3422_v57 = vrot.slane %v324_v56, %v5349_v7  ;;  %v3426_v61 = vrot.slane %v324_v56, %v5332_v48 }
 0x647   : > { %4943 = vpow2.f32 %v4213_v47 }
 0x648   : > { %4945 = vpow2.f32 %v4211_v40 }
 0x649   : > { %4947 = vrcp.f32 %v3386_v33 }
 0x652   : > { %v4942_v29 = vpop.eup %4941 }
 0x653   : > { %v3398_v34 = vadd.f32 1.0, %v4942_v29 }
 0x654   : > { %v4944_v31 = vpop.eup %4943 }
 0x655   : > { %v4946_v27 = vpop.eup %4945  ;;  %v3399_v53 = vadd.f32 1.0, %v4944_v31  ;;  %4949 = vrcp.f32 %v3398_v34 }
 0x656   : > { %v3387_v37 = vadd.f32 1.0, %v4946_v27  ;;  %v4948_v58 = vpop.eup %4947 }
 0x657   : > { %4951 = vrcp.f32 %v3399_v53 }
 0x662   : > { %v4950_v59 = vpop.eup %4949 }
 0x663   : > { %v3429_v2 = vmul.f32 %v4950_v59, %v3422_v57 }
 0x664   : > { %v4952_v60 = vpop.eup %4951 }
 0x665   : > { %v3430_v3 = vmul.f32 %v4952_v60, %v3426_v61 }
 0x67e   : > { %v3250_v54 = vpop.f32.mrf.mxu1 }
 0x67f   : > { %v3251_v30 = vadd.f32 %v3250_v54, %v3031_v32  ;;  %v3291_v36 = vpop.f32.mrf.mxu0 }
 0x680   : > { %v3252_v39 = vpop.f32.mrf.mxu1 }
 0x681   : > { %v3292_v41 = vadd.f32 %v3291_v36, %v3251_v30  ;;  %v3253_v42 = vadd.f32 %v3252_v39, %v3035_v35  ;;  %v3293_v44 = vpop.f32.mrf.mxu0  ;;  %v742_v39 = vld [vmem:[#allocation12 + $0x4] sm:$0x3] }
 0x682   : > { %v3254_v45 = vpop.f32.mrf.mxu1 }
 0x683   : > { %4953 = vtanh.f32 %v3292_v41  ;;  %v3294_v46 = vadd.f32 %v3293_v44, %v3253_v42  ;;  %v3295_v50 = vpop.f32.mrf.mxu0  ;;  %v3643_v41 = vrot.slane %v742_v39, %v5349_v7  ;;  %v3647_v42 = vrot.slane %v742_v39, %v5332_v48 }
 0x684   : > { %4955 = vrcp.f32 %v3387_v37  ;;  %v3255_v51 = vpop.f32.mrf.mxu1 }
 0x685   : > { %4957 = vtanh.f32 %v3294_v46  ;;  %v3296_v55 = vpop.f32.mrf.mxu0 }
 0x690   : > { %v4954_v38 = vpop.eup %4953 }
 0x691   : > { %v4956_v63 = vpop.eup %4955  ;;  %v3431_v0 = vmul.f32 %v4954_v38, %v4948_v58 }
 0x692   : > { %v4958_v1 = vpop.eup %4957 }
 0x693   : > { %v3432_v5 = vmul.f32 %v4958_v1, %v4956_v63  ;;  %v3433_v6 = vadd.f32 %v3431_v0, %v3429_v2 }
 0x695   : > { %v3434_v8 = vadd.f32 %v3432_v5, %v3430_v3 }
 0x697   : > { %v3460_v9 = vcombine.low %v3433_v6, %v3434_v8 }
 0x699   : > { %v3467_v10 = vrot.slane %v3460_v9, %v5368_v62 }
 0x69b   : > { %v3474_v11 = vrot.slane %v3467_v10, %v5368_v62 }
 0x69d   : > { %3476 = vst.msk [vmem:[#allocation2 + $0x1] ss:$2 sm:$0x3] %vm5335_vm0, %v3474_v11  ;;  %3732 = vst.msk [vmem:[%s5321_s10 + $0x4] sm:$0x3] %vm5335_vm0, %v3474_v11 }
 0x6be   : > { %v3332_v16 = vpop.f32.mrf.mxu1 }
 0x6bf   : > { %v3333_v17 = vadd.f32 %v3332_v16, %v3039_v14  ;;  %v3373_v18 = vpop.f32.mrf.mxu0 }
 0x6c0   : > { %v3334_v19 = vpop.f32.mrf.mxu1 }
 0x6c1   : > { %v3374_v21 = vadd.f32 %v3373_v18, %v3333_v17  ;;  %v3335_v22 = vadd.f32 %v3334_v19, %v3043_v15  ;;  %v3375_v23 = vpop.f32.mrf.mxu0 }
 0x6c2   : > { %v3336_v24 = vpop.f32.mrf.mxu1 }
 0x6c3   : > { %v4214_v4 = vmul.f32 -1.442695, %v3374_v21  ;;  %v3376_v25 = vadd.f32 %v3375_v23, %v3335_v22  ;;  %v3377_v47 = vpop.f32.mrf.mxu0 }
 0x6c4   : > { %v3337_v40 = vpop.f32.mrf.mxu1 }
 0x6c5   : > { %4959 = vpow2.f32 %v4214_v4  ;;  %v4215_v26 = vmul.f32 -1.442695, %v3376_v25  ;;  %v3378_v49 = vpop.f32.mrf.mxu0 }
 0x6c7   : > { %4961 = vpow2.f32 %v4215_v26 }
 0x6c8   : > { %4963 = vtanh.f32 %v3433_v6 }
 0x6d2   : > { %v4960_v43 = vpop.eup %4959 }
 0x6d3   : > { %v3412_v28 = vadd.f32 1.0, %v4960_v43 }
 0x6d4   : > { %v4962_v29 = vpop.eup %4961 }
 0x6d5   : > { %4965 = vrcp.f32 %v3412_v28  ;;  %v3413_v20 = vadd.f32 1.0, %v4962_v29  ;;  %v4964_v31 = vpop.eup %4963 }
 0x6d6   : > { %4967 = vtanh.f32 %v3434_v8 }
 0x6d7   : > { %4969 = vrcp.f32 %v3413_v20 }
 0x6e2   : > { %v4966_v32 = vpop.eup %4965 }
 0x6e3   : > { %v4968_v33 = vpop.eup %4967  ;;  %v3437_v34 = vmul.f32 %v4966_v32, %v4964_v31 }
 0x6e4   : > { %v4970_v27 = vpop.eup %4969 }
 0x6e5   : > { %v3438_v35 = vmul.f32 %v4970_v27, %v4968_v33  ;;  %v3477_v30 = vpack.c.bf16 %v3437_v34, %v3437_v34 }
 0x6e7   : > { %v3441_v53 = vcombine.low %v3437_v34, %v3438_v35  ;;  %v3478_v54 = vpack.c.bf16 %v3438_v35, %v3438_v35 }
 0x6e9   : > { %v3448_v36 = vrot.slane %v3441_v53, %v5368_v62  ;;  %3682 = vmatprep.mubr.bf16.mxu1 %v3478_v54 }
 0x6ea   : > { %3683 = vmatmul.mubr.bf16.vlgmr.msra.gmra.mxu1 %v3477_v30 }
 0x6eb   : > { %v3455_v37 = vrot.slane %v3448_v36, %v5368_v62 }
 0x6ed   : > { %3457 = vst.msk [vmem:[#allocation2] ss:$2 sm:$0x3] %vm5335_vm0, %v3455_v37  ;;  %3731 = vst.msk [vmem:[%s5321_s10 + $0x2] sm:$0x3] %vm5335_vm0, %v3455_v37 }
 0x7aa   : > { %v3684_v44 = vpop.f32.mrf.mxu1 }
 0x7ab   : > { %v3685_v45 = vadd.f32 %v3684_v44, %v3643_v41 }
 0x7ac   : > { %v3686_v46 = vpop.f32.mrf.mxu1 }
 0x7ad   : > { %v3687_v50 = vadd.f32 %v3686_v46, %v3647_v42  ;;  %v3692_v55 = vsel %vm3691_vm6, %v3685_v45, -inf }
 0x7ae   : > { %v3688_v51 = vpop.f32.mrf.mxu1 }
 0x7af   : > { %v3693_v56 = vsel %vm3691_vm6, %v3687_v50, -inf }
 0x7b0   : > { %v3689_v58 = vpop.f32.mrf.mxu1  ;;  %v3694_v59 = vmax.f32 %v3692_v55, %v3693_v56 }
 0x7b2   : > { %3695 = vmax.xlane.f32.xlu1 %v3694_v59 }
 0x83b   : > { %v3696_v60 = vpop.xlane.xlu1 %3695 }
 0x83c   : > { %v3697_v57 = vsub.f32 %v3685_v45, %v3696_v60  ;;  %v3698_v61 = vsub.f32 %v3687_v50, %v3696_v60 }
 0x83e   : > { %v3699_v38 = vmul.f32 1.442695, %v3697_v57  ;;  %v3701_v7 = vmul.f32 1.442695, %v3698_v61 }
 0x840   : > { %4971 = vpow2.f32 %v3699_v38 }
 0x841   : > { %4973 = vpow2.f32 %v3701_v7 }
 0x84d   : > { %v4972_v48 = vpop.eup %4971 }
 0x84e   : > { %v4974_v63 = vpop.eup %4973  ;;  %v3703_v0 = vsel %vm3691_vm6, %v4972_v48, 0.0 }
 0x84f   : > { %v3704_v1 = vsel %vm3691_vm6, %v4974_v63, 0.0 }
 0x850   : > { %v3705_v2 = vadd.f32 %v3704_v1, %v3703_v0 }
 0x852   : > { %3706 = vadd.xlane.f32.xlu1 %v3705_v2 }
 0x8db   : > { %v3707_v3 = vpop.xlane.xlu1 %3706 }
 0x8dc   : > { %4975 = vlog2.f32 %v3707_v3 }
 0x8e9   : > { %v4976_v5 = vpop.eup %4975 }
 0x8ea   : > { %v3709_v6 = vmul.f32 0.6931472, %v4976_v5 }
 0x8ec   : > { %v3710_v8 = vsub.f32 %v3697_v57, %v3709_v6  ;;  %v3711_v9 = vsub.f32 %v3698_v61, %v3709_v6 }
 0x8ee   : > { %v3714_v10 = vcombine.low %v3710_v8, %v3711_v9 }
 0x8f0   : > { %v3721_v11 = vrot.slane %v3714_v10, %v5368_v62 }
 0x8f2   : > { %v3728_v12 = vrot.slane %v3721_v11, %v5368_v62 }
 0x8f4   : > { %3730 = vst.msk [vmem:[%s5321_s10] sm:$0x3] %vm5335_vm0, %v3728_v12 }
 0x8f5 PF: > { %s5505_s12 = smov %s5254_s27  ;;  %p23_p11 = scmp.ge.s32.totalorder %s5254_s27, 10  }
 0x8f6   : > { %s5506_s27 = smov %s5127_s28  ;;  %s5507_s28 = smov %s5131_s29 }
 0x8f7   : > { %s5508_s29 = smov %s5274_s19  ;;  %s5509_s30 = smov %s5505_s12 }
 0x8f8   :  { %25 = sbr.rel (!%p23_p11) target bundleno = 10 (0xa), region = 101 }
 0x8fd   :  { %3755 = vsyncpa [#allocation8], 1 }
 0x8fe   :  { %3757 = vsyncpa [#allocation8 + $0x1], 1 }
 0x8ff   :  { %3758 = vsyncpa [#allocation10], 1 }
 0x900   :  { %3759 = vsyncpa [#allocation13], 1 }

</bundles_post_ra>
